<compile_context>
chip_gen: v6e
topology: v6e:2x2x1
jax: 0.10.0
libtpu: 0.0.40
codegen_flags: <defaults>
</compile_context>

<pallas_src>
import functools

import jax
import jax.numpy as jnp
from jax import lax
from jax.experimental import pallas as pl
from jax.experimental.pallas import tpu as pltpu


def _lrp_adaptive_avgpool_kernel(a_ref, r_ref, p_ref, pt_ref, o_ref, *, eps, inv_k):
    # a_ref : (bm, GLW)   g pooling-window rows folded onto the lane axis
    # r_ref : (bm, GWo)   relevance of the corresponding pooled outputs
    # p_ref : (GLW, GWo)  block-diagonal 0/1 pooling matrix (lane -> output column)
    # pt_ref: (GWo, GLW)  transpose, pre-scaled by 1/(kh*kw)
    a = a_ref[...]                                     # native dtype, no f32 copy
    r = r_ref[...].astype(jnp.float32)

    # z = adaptive-window mean + eps (matches the module's forward).  HIGHEST keeps
    # f32 inputs from dropping to a single bf16 MXU pass; bf16 inputs take the
    # native path.  Accumulation is f32 either way.
    zsum = jnp.dot(a, p_ref[...], preferred_element_type=jnp.float32,
                   precision=lax.Precision.HIGHEST)
    s = r / (zsum * inv_k + eps)                       # exact divide; free when mem-bound

    # c = s / (kh*kw) broadcast back over each window (1/K folded into pool_t).
    # Each pool_t column has exactly one nonzero, so this matmul is a pure scatter.
    s_full = jnp.dot(s, pt_ref[...], preferred_element_type=jnp.float32,
                     precision=lax.Precision.HIGHEST)
    o_ref[...] = (a * s_full).astype(o_ref.dtype)      # r_out = a * c


def _tpu_profile():
    """(vmem_capacity_bytes, multi_tensorcore) with safe fallbacks."""
    vmem = None
    try:
        vmem = int(pltpu.get_tpu_info().vmem_capacity_bytes)
    except Exception:
        vmem = None
    kind = ""
    try:
        kind = jax.devices()[0].device_kind.lower()
    except Exception:
        pass
    multi_tc = any(t in kind for t in ("v4", "v5p", "v7"))
    if vmem is None:
        vmem = (64 << 20) if "v7" in kind else (128 << 20)
    return vmem, multi_tc


def _pick_group(rows, unit_lane, lane_target=512, lane_cap=1024):
    """Fold g consecutive output rows onto the lane axis.

    Smallest divisor g of `rows` with g*unit_lane >= lane_target and a multiple of
    128 (dense unmasked stores); otherwise the largest divisor keeping
    g*unit_lane <= lane_cap.  The cap bounds the block-diagonal pooling matrix and
    the g^2 MXU overhead it implies.
    """
    if unit_lane >= lane_target:
        return 1
    best = 1
    max_g = min(rows, max(1, lane_cap // unit_lane))
    for g in range(1, max_g + 1):
        if rows % g:
            continue
        best = g
        lw = g * unit_lane
        if lw >= lane_target and lw % 128 == 0:
            return g
    return best


def _pick_block_rows(m, row_bytes, target_bytes, multi_core):
    """Rows per grid step: big blocks, no padding, 32-row aligned when tiled."""
    bm = max(8, min(int(target_bytes) // max(int(row_bytes), 1), 1 << 15))
    if multi_core and m >= 64:
        bm = min(bm, max(8, m // 4))   # keep >= ~4 "parallel" steps for 2 TensorCores
    bm = min(bm, m)
    if bm == m:
        return m                       # block dim == full array dim is always legal
    best8 = None
    for d in range(bm, 7, -1):
        if m % d:
            continue
        if d % 32 == 0:
            return d                   # exact divisor, no tail, packs all dtypes
        if best8 is None and d % 8 == 0:
            best8 = d
    if best8 is not None:
        return best8
    # No friendly divisor: 32-aligned block with a masked partial last block.
    # Garbage rows there only feed their own (masked-out) output rows, so safe.
    return (bm // 32) * 32 if bm >= 32 else (bm // 8) * 8


def lrp_adaptive_avgpool2d(a, r, *, eps=1e-5):
    """a: (N, C, H, W) activations; r: (N, C, Ho, Wo) output relevance.

    Returns relevance redistributed onto the input, shape (N, C, H, W), dtype of a.
    """
    N, C, H, W = a.shape
    rN, rC, Ho, Wo = r.shape
    assert (rN, rC) == (N, C)
    # TODO(synk): PyTorch AdaptiveAvgPool2d with non-divisible output sizes builds
    # unequal/overlapping windows; only the equal/disjoint case is implemented.
    assert H % Ho == 0 and W % Wo == 0, "adaptive windows must be equal & disjoint"
    kh, kw = H // Ho, W // Wo
    K = kh * kw
    unit_lane = kh * W                  # lanes holding one output row's window inputs
    rows = N * C * Ho

    # Lane folding (free row-major views, no transpose / pad copies).
    g = _pick_group(rows, unit_lane)
    glw, gwo = g * unit_lane, g * Wo
    m = rows // g
    a2 = a.reshape(m, glw)
    r2 = r.reshape(m, gwo)

    # Block-diagonal 0/1 pooling matrix: lane l = u*kh*W + i*W + x (u-th folded
    # output row, window row i, input column x) feeds output column u*Wo + x//kw.
    lane = jnp.arange(glw)
    col_of_lane = (lane // unit_lane) * Wo + (lane % W) // kw
    pool = (col_of_lane[:, None] == jnp.arange(gwo)[None, :]).astype(a.dtype)
    pool_t = pool.T.astype(jnp.float32) * (1.0 / K)   # fold 1/(kh*kw) into the scatter

    # Generation-aware sizing: 128 MiB VMEM / 1 TC (v5e, v6e) -> big blocks, few
    # steps; 64 MiB VMEM / 2 TCs (v7x) -> smaller blocks, several parallel steps.
    vmem_cap, multi_tc = _tpu_profile()
    big_vmem = vmem_cap >= (100 << 20)
    target_block_bytes = (8 << 20) if big_vmem else (3 << 20)
    vmem_limit = max(32 << 20, min(vmem_cap * 3 // 4, 96 << 20))
    bm = _pick_block_rows(m, glw * jnp.dtype(a.dtype).itemsize,
                          target_block_bytes, multi_tc)
    grid_m = pl.cdiv(m, bm)

    kernel = functools.partial(_lrp_adaptive_avgpool_kernel,
                               eps=float(eps), inv_k=1.0 / K)
    out2 = pl.pallas_call(
        kernel,
        out_shape=jax.ShapeDtypeStruct((m, glw), a.dtype),
        grid=(grid_m,),
        in_specs=[
            pl.BlockSpec((bm, glw), lambda i: (i, 0)),
            pl.BlockSpec((bm, gwo), lambda i: (i, 0)),
            # Constant pooling matrices: the block index never changes, so they are
            # DMA'd once and stay resident across the grid.
            pl.BlockSpec((glw, gwo), lambda i: (0, 0)),
            pl.BlockSpec((gwo, glw), lambda i: (0, 0)),
        ],
        out_specs=pl.BlockSpec((bm, glw), lambda i: (i, 0)),
        compiler_params=pltpu.CompilerParams(
            dimension_semantics=("parallel",),
            vmem_limit_bytes=int(vmem_limit),
        ),
    )(a2, r2, pool, pool_t)

    return out2.reshape(N, C, H, W)


def _lrp_adaptive_avgpool2d_ref(a, r, *, eps=1e-5):
    """Pure-JAX reference matching the PyTorch module semantics."""
    N, C, H, W = a.shape
    _, _, Ho, Wo = r.shape
    kh, kw = H // Ho, W // Wo
    a6 = a.reshape(N, C, Ho, kh, Wo, kw).astype(jnp.float32)
    z = a6.mean(axis=(3, 5)) + eps                      # adaptive avg pool + eps
    s = r.astype(jnp.float32) / z                       # detached ratio
    c = jnp.repeat(jnp.repeat(s, kh, axis=2), kw, axis=3) / (kh * kw)
    return (a * c).astype(a.dtype)


if __name__ == "__main__":
    key = jax.random.PRNGKey(0)
    ka, kr, kr2 = jax.random.split(key, 3)

    N, C, H, W = 2, 4, 16, 16
    # Positive (post-ReLU-style) activations keep the pooled denominator away from
    # zero so r/z does not amplify float rounding noise.
    a = jax.random.uniform(ka, (N, C, H, W), dtype=jnp.float32, minval=0.25, maxval=1.25)

    # Case 1: AdaptiveAvgPool2d((8, 8)) -> 2x2 disjoint windows.
    r = jax.random.normal(kr, (N, C, 8, 8), dtype=jnp.float32)
    out = jax.block_until_ready(lrp_adaptive_avgpool2d(a, r, eps=1e-5))
    ref = _lrp_adaptive_avgpool2d_ref(a, r, eps=1e-5)
    assert out.shape == (N, C, H, W)
    # With HIGHEST-precision passes the observed error is ~1e-6; the bound is kept
    # conservative so the self-check does not depend on the MXU pass-count policy.
    assert jnp.allclose(out, ref, atol=2e-3, rtol=2e-3)

    # Case 2: AdaptiveAvgPool2d((1, 1)) -> global average pooling (the canonical
    # use of this module in classifier LRP).
    r_g = jax.random.normal(kr2, (N, C, 1, 1), dtype=jnp.float32)
    out_g = jax.block_until_ready(lrp_adaptive_avgpool2d(a, r_g, eps=1e-5))
    ref_g = _lrp_adaptive_avgpool2d_ref(a, r_g, eps=1e-5)
    assert out_g.shape == (N, C, H, W)
    assert jnp.allclose(out_g, ref_g, atol=2e-3, rtol=2e-3)

    print("KERNEL_OK")
</pallas_src>

<mosaic_0001>
module attributes {stable_mosaic.version = 11 : i64} {
  func.func @_lrp_adaptive_avgpool_kernel(%arg0: i32, %arg1: memref<4x512xf32, #tpu.memory_space<vmem>>, %arg2: memref<4x128xf32, #tpu.memory_space<vmem>>, %arg3: memref<512x128xf32, #tpu.memory_space<vmem>>, %arg4: memref<128x512xf32, #tpu.memory_space<vmem>>, %arg5: memref<4x512xf32, #tpu.memory_space<vmem>>) attributes {dimension_semantics = [#tpu.dimension_semantics<parallel>], iteration_bounds = array<i64: 1>, scalar_prefetch = 0 : i64, scratch_operands = 0 : i64, tpu.core_type = #tpu.core_type<tc>, window_params = [{transform_indices = @transform_0, window_bounds = array<i64: 4, 512>}, {transform_indices = @transform_1, window_bounds = array<i64: 4, 128>}, {pipeline_mode = #tpu.pipeline_mode<synchronous>, transform_indices = @transform_2, window_bounds = array<i64: 512, 128>}, {pipeline_mode = #tpu.pipeline_mode<synchronous>, transform_indices = @transform_3, window_bounds = array<i64: 128, 512>}, {transform_indices = @transform_4, window_bounds = array<i64: 4, 512>}]} {
    %c0 = arith.constant 0 : index
    %c0_0 = arith.constant 0 : index
    %0 = vector.load %arg1[%c0, %c0_0] : memref<4x512xf32, #tpu.memory_space<vmem>>, vector<4x512xf32>
    %c0_1 = arith.constant 0 : index
    %c0_2 = arith.constant 0 : index
    %1 = vector.load %arg2[%c0_1, %c0_2] : memref<4x128xf32, #tpu.memory_space<vmem>>, vector<4x128xf32>
    %c0_3 = arith.constant 0 : index
    %c0_4 = arith.constant 0 : index
    %2 = vector.load %arg3[%c0_3, %c0_4] : memref<512x128xf32, #tpu.memory_space<vmem>>, vector<512x128xf32>
    %cst = arith.constant dense<0.000000e+00> : vector<4x128xf32>
    %3 = tpu.matmul %0, %2, %cst {dimension_numbers = #tpu.dot_dimension_numbers<[1], [0], [0], [1], [0, 0, 1, 1], [], []>, precision = #tpu.contract_precision<fp32>} : vector<4x512xf32>, vector<512x128xf32>, vector<4x128xf32> -> vector<4x128xf32>
    %cst_5 = arith.constant 2.500000e-01 : f32
    %4 = vector.broadcast %cst_5 : f32 to vector<4x128xf32>
    %5 = arith.mulf %3, %4 : vector<4x128xf32>
    %cst_6 = arith.constant 9.99999974E-6 : f32
    %6 = vector.broadcast %cst_6 : f32 to vector<4x128xf32>
    %7 = arith.addf %5, %6 : vector<4x128xf32>
    %8 = arith.divf %1, %7 : vector<4x128xf32>
    %c0_7 = arith.constant 0 : index
    %c0_8 = arith.constant 0 : index
    %9 = vector.load %arg4[%c0_7, %c0_8] : memref<128x512xf32, #tpu.memory_space<vmem>>, vector<128x512xf32>
    %cst_9 = arith.constant dense<0.000000e+00> : vector<4x512xf32>
    %10 = tpu.matmul %8, %9, %cst_9 {dimension_numbers = #tpu.dot_dimension_numbers<[1], [0], [0], [1], [0, 0, 1, 1], [], []>, precision = #tpu.contract_precision<fp32>} : vector<4x128xf32>, vector<128x512xf32>, vector<4x512xf32> -> vector<4x512xf32>
    %11 = arith.mulf %0, %10 : vector<4x512xf32>
    %c0_10 = arith.constant 0 : index
    %c0_11 = arith.constant 0 : index
    %12 = vector.load %arg5[%c0_10, %c0_11] : memref<4x512xf32, #tpu.memory_space<vmem>>, vector<4x512xf32>
    tpu.vector_store %arg5[%c0_10, %c0_11], %11 {strides = array<i32>} : memref<4x512xf32, #tpu.memory_space<vmem>>, vector<4x512xf32>,
    return
  }
  func.func @transform_0(%arg0: i32) -> (i32, i32) {
    %c0_i32 = arith.constant 0 : i32
    %c0_i32_0 = arith.constant 0 : i32
    return %arg0, %c0_i32 : i32, i32
  }
  func.func @transform_1(%arg0: i32) -> (i32, i32) {
    %c0_i32 = arith.constant 0 : i32
    %c0_i32_0 = arith.constant 0 : i32
    return %arg0, %c0_i32 : i32, i32
  }
  func.func @transform_2(%arg0: i32) -> (i32, i32) {
    %c0_i32 = arith.constant 0 : i32
    %c0_i32_0 = arith.constant 0 : i32
    %c0_i32_1 = arith.constant 0 : i32
    return %c0_i32, %c0_i32_0 : i32, i32
  }
  func.func @transform_3(%arg0: i32) -> (i32, i32) {
    %c0_i32 = arith.constant 0 : i32
    %c0_i32_0 = arith.constant 0 : i32
    %c0_i32_1 = arith.constant 0 : i32
    return %c0_i32, %c0_i32_0 : i32, i32
  }
  func.func @transform_4(%arg0: i32) -> (i32, i32) {
    %c0_i32 = arith.constant 0 : i32
    %c0_i32_0 = arith.constant 0 : i32
    return %arg0, %c0_i32 : i32, i32
  }
}

</mosaic_0001>

<bundles_post_ra>
// kernel: tpu_custom_call.1
= control target key start
LH: loop header
LB: loop body
LE: loop exit
PB: predicated region body
PF: predicated region fallthrough
CT: control target
= control target key end

     0   :  { %9 = vsyncpa [#allocation3], 0  ;;  %s6498_s0 = inlined_call_operand.hbm [shape: f32[4,512], index: 0, kind: input, shape index: {}]   ;;  %s6499_s1 = inlined_call_operand.hbm [shape: f32[4,128], index: 1, kind: input, shape index: {}]   ;;  %s6500_s2 = inlined_call_operand.hbm [shape: f32[512,128], index: 2, kind: input, shape index: {}]   ;;  %s6501_s3 = inlined_call_operand.hbm [shape: f32[128,512], index: 3, kind: input, shape index: {}]   ;;  %s6502_s4 = inlined_call_operand.hbm [shape: f32[4,512], index: 4, kind: output, shape index: {}]  }
   0x1   :  { %10 = vsyncpa [#allocation6], 0 }
   0x2   :  { %11 = vsyncpa [#allocation9], 0 }
   0x3   :  { %12 = vsyncpa [#allocation4], 0  ;;  %s4217_s15 = smov [#allocation5]   ;;  %s4218_s17 = smov [#allocation2]  }
   0x4   :  { %s29_s16 = sshll.u32 %s4217_s15, 4  ;;  %s19_s18 = sshll.u32 %s4218_s17, 4  ;;  %s30_s16 = int_to_ptr.vmem [resolvable:$true] %s29_s16  ;;  %s20_s18 = int_to_ptr.vmem [resolvable:$true] %s19_s18 }
   0x5   :  { %s4117_s19 = scalar_lea.vmem %s30_s16, 64  ;;  %p4122_p1 = scmp.lt.s32.totalorder %s30_s16, %s30_s16 }
   0x6   :  { %p4118_p0 = scmp.ne.s32.totalorder %s30_s16, %s4117_s19  ;;  %p4123_p2 = scmp.lt.s32.totalorder %s4117_s19, %s4117_s19 }
   0x8   :  { %p4124_p3 = por %p4123_p2, %p4122_p1 }
   0xa   :  { %p4125_p4 = pnand %p4124_p3, %p4118_p0 }
   0xc   :  { %4128 = shalt.err (!%p4125_p4)
}
   0xd   :  { %32 = dma.hbm_to_vmem [thread:$0]  %s6499_s1, 64, %s30_s16, [#allocation6]  }
   0xe   :  { %s4137_s22 = scalar_lea.vmem %s20_s18, 256  ;;  %p4142_p6 = scmp.lt.s32.totalorder %s20_s18, %s20_s18 }
   0xf   :  { %p4138_p5 = scmp.ne.s32.totalorder %s20_s18, %s4137_s22  ;;  %p4143_p7 = scmp.lt.s32.totalorder %s4137_s22, %s4137_s22 }
  0x11   :  { %p4144_p8 = por %p4143_p7, %p4142_p6 }
  0x13   :  { %p4145_p9 = pnand %p4144_p8, %p4138_p5 }
  0x15   :  { %4148 = shalt.err (!%p4145_p9)
}
  0x16   :  { %22 = dma.hbm_to_vmem [thread:$0]  %s6498_s0, 256, %s20_s18, [#allocation3]  }
  0x17   :  { %s4219_s25 = smov [#allocation7]  }
  0x18   :  { %s38_s26 = sshll.u32 %s4219_s25, 4  ;;  %s39_s26 = int_to_ptr.vmem [resolvable:$true] %s38_s26 }
  0x19   :  { %s4157_s27 = scalar_lea.vmem %s39_s26, 8192  ;;  %p4162_p11 = scmp.lt.s32.totalorder %s39_s26, %s39_s26 }
  0x1a   :  { %p4158_p10 = scmp.ne.s32.totalorder %s39_s26, %s4157_s27  ;;  %p4163_p12 = scmp.lt.s32.totalorder %s4157_s27, %s4157_s27 }
  0x1c   :  { %p4164_p13 = por %p4163_p12, %p4162_p11 }
  0x1e   :  { %p4165_p0 = pnand %p4164_p13, %p4158_p10 }
  0x20   :  { %4168 = shalt.err (!%p4165_p0)
}
  0x21   :  { %s4220_s1 = smov 128   ;;  %s4221_s28 = smov 8  }
  0x22   :  { %44 = dma.hbm_to_vmem [thread:$0]  %s6500_s2, 8192, %s39_s26, [#allocation6], %s4220_s1, %s4220_s1, %s4221_s28  }
  0x23   :  { %s4222_s5 = smov [#allocation8]  }
  0x24   :  { %s50_s6 = sshll.u32 %s4222_s5, 4  ;;  %s51_s6 = int_to_ptr.vmem [resolvable:$true] %s50_s6 }
  0x25   :  { %s4177_s0 = scalar_lea.vmem %s51_s6, 8192  ;;  %p4182_p2 = scmp.lt.s32.totalorder %s51_s6, %s51_s6 }
  0x26   :  { %p4178_p1 = scmp.ne.s32.totalorder %s51_s6, %s4177_s0  ;;  %p4183_p3 = scmp.lt.s32.totalorder %s4177_s0, %s4177_s0 }
  0x28   :  { %p4184_p4 = por %p4183_p3, %p4182_p2 }
  0x2a   :  { %p4185_p5 = pnand %p4184_p4, %p4178_p1 }
  0x2c   :  { %4188 = shalt.err (!%p4185_p5)
}
  0x2d   :  { %s4223_s7 = smov 512   ;;  %s4224_s8 = smov 32  }
  0x2e   :  { %56 = dma.hbm_to_vmem [thread:$0]  %s6501_s3, 8192, %s51_s6, [#allocation9], %s4223_s7, %s4223_s7, %s4224_s8  }
  0x2f   :  { %4209 = dma.done.wait [#allocation3], 256  }
  0x30   :  { %4210 = vsyncadd [#allocation3], 4294967040 }
  0x31   :  { %4211 = dma.done.wait [#allocation6], 8256  }
  0x32   :  { %4212 = vsyncadd [#allocation6], 4294959040 }
  0x33   :  { %4213 = dma.done.wait [#allocation9], 8192  }
  0x34   :  { %4214 = vsyncadd [#allocation9], 4294959104  ;;  %v103_v0 = vld [vmem:[#allocation7 + $0xf8] sm:$0xff]  ;;  %v102_v2 = vld [vmem:[#allocation7 + $0xf0] sm:$0xff]  ;;  %s4226_s2 = smov [#allocation10]  }
  0x35   :  { %v87_v1 = vld [vmem:[#allocation7 + $0x78] sm:$0xff]  ;;  %v4264_v3 = vand.u32 4294901760, %v103_v0  ;;  %v4268_v5 = vand.u32 4294901760, %v102_v2  ;;  %v86_v6 = vld [vmem:[#allocation7 + $0x70] sm:$0xff]  ;;  %v101_v7 = vld [vmem:[#allocation7 + $0xe8] sm:$0xff]  ;;  %s3662_s3 = sshll.u32 %s4226_s2, 4  ;;  %s3663_s3 = int_to_ptr.vmem [resolvable:$true] %s3662_s3 }
  0x36   :  { %v4266_v4 = vand.u32 4294901760, %v87_v1  ;;  %v85_v8 = vld [vmem:[#allocation7 + $0x68] sm:$0xff]  ;;  %v4270_v9 = vand.u32 4294901760, %v86_v6  ;;  %v4272_v10 = vand.u32 4294901760, %v101_v7  ;;  %v100_v12 = vld [vmem:[#allocation7 + $0xe0] sm:$0xff]  ;;  %v99_v14 = vld [vmem:[#allocation7 + $0xd8] sm:$0xff]  ;;  %p4194_p7 = scmp.lt.s32.totalorder %s3663_s3, %s3663_s3 }
  0x37   :  { %v4274_v11 = vand.u32 4294901760, %v85_v8  ;;  %v84_v13 = vld [vmem:[#allocation7 + $0x60] sm:$0xff]  ;;  %3673 = vmatprep.subr.mxu0 %v4264_v3  ;;  %v4277_v15 = vand.u32 4294901760, %v100_v12  ;;  %v4281_v17 = vand.u32 4294901760, %v99_v14  ;;  %v4284_v18 = vsub.f32 %v103_v0, %v4264_v3  ;;  %v4286_v19 = vld [vmem:[#allocation7 + $0x58] sm:$0xff]  ;;  %v4288_v20 = vld [vmem:[#allocation7 + $0xd0] sm:$0xff] }
  0x38   :  { %v4279_v16 = vand.u32 4294901760, %v84_v13  ;;  %v4290_v21 = vld [vmem:[#allocation7 + $0x50] sm:$0xff]  ;;  %3674 = vmatpush3.msra.mxu0 %v4266_v4  ;;  %v4294_v22 = vand.u32 4294901760, %v4286_v19  ;;  %v4297_v23 = vsub.f32 %v87_v1, %v4266_v4  ;;  %v4300_v24 = vand.u32 4294901760, %v4288_v20  ;;  %v4305_v26 = vld [vmem:[#allocation7 + $0xc8] sm:$0xff]  ;;  %v4309_v28 = vld [vmem:[#allocation7 + $0xc0] sm:$0xff] }
  0x39   :  { %v4303_v25 = vsub.f32 %v102_v2, %v4268_v5  ;;  %v4307_v27 = vld [vmem:[#allocation7 + $0x48] sm:$0xff]  ;;  %3675 = vmatprep.subr.mxu0 %v4268_v5  ;;  %v6516_v29 = vand.u32 4294901760, %v4284_v18  ;;  %v4314_v30 = vand.u32 4294901760, %v4290_v21  ;;  %v4317_v31 = vsub.f32 %v86_v6, %v4270_v9  ;;  %v4331_v37 = vld [vmem:[#allocation7 + $0x40] sm:$0xff]  ;;  %v4355_v46 = vld [vmem:[#allocation7 + $0xb8] sm:$0xff]  ;;  %s4189_s11 = scalar_lea.vmem %s3663_s3, 256 }
  0x3a   :  { %v4320_v32 = vand.u32 4294901760, %v4305_v26  ;;  %3676 = vmatpush3.msra.mxu0 %v4270_v9  ;;  %v6514_v33 = vand.u32 4294901760, %v4297_v23  ;;  %v4326_v35 = vsub.f32 %v101_v7, %v4272_v10  ;;  %v4329_v36 = vand.u32 4294901760, %v4307_v27  ;;  %v4365_v51 = vld [vmem:[#allocation7 + $0x38] sm:$0xff]  ;;  %v4372_v56 = vld [vmem:[#allocation7 + $0xb0] sm:$0xff]  ;;  %v4396_v2 = vld [vmem:[#allocation7 + $0xa8] sm:$0xff]  ;;  %p4190_p6 = scmp.ne.s32.totalorder %s3663_s3, %s4189_s11  ;;  %p4195_p8 = scmp.lt.s32.totalorder %s4189_s11, %s4189_s11 }
  0x3b   :  { %6789 = vst [vmem:[#allocation15_spill] sm:$0xff] %v4314_v30  ;;  %v6513_v34 = vand.u32 4294901760, %v4303_v25  ;;  %3677 = vmatprep.subr.mxu0 %v4272_v10  ;;  %v370_v38 = vsub.f32 %v4284_v18, %v6516_v29  ;;  %v6511_v39 = vand.u32 4294901760, %v4317_v31  ;;  %v4339_v40 = vsub.f32 %v85_v8, %v4274_v11  ;;  %v4384_v61 = vld [vmem:[#allocation7 + $0x30] sm:$0xff] }
  0x3c   :  { %6790 = vst [vmem:[#allocation16_spill] sm:$0xff] %v4320_v32  ;;  %6791 = vst [vmem:[#allocation17_spill] sm:$0xff] %v4329_v36  ;;  %v4342_v41 = vand.u32 4294901760, %v4309_v28  ;;  %3678 = vmatpush3.msra.mxu0 %v4274_v11  ;;  %v258_v42 = vsub.f32 %v4297_v23, %v6514_v33  ;;  %v6509_v44 = vand.u32 4294901760, %v4326_v35  ;;  %v4353_v45 = vsub.f32 %v100_v12, %v4277_v15  ;;  %p4196_p9 = por %p4195_p8, %p4194_p7 }
  0x3d   :  { %v377_v43 = vsub.f32 %v4303_v25, %v6513_v34  ;;  %3679 = vmatprep.subr.mxu0 %v4277_v15  ;;  %v371_v47 = vand.u32 4294901760, %v370_v38  ;;  %v265_v48 = vsub.f32 %v4317_v31, %v6511_v39  ;;  %v6508_v49 = vand.u32 4294901760, %v4339_v40  ;;  %v4487_v39 = vld [vmem:[#allocation7 + $0x90] sm:$0xff] }
  0x3e   :  { %6792 = vst [vmem:[#allocation18_spill] sm:$0xff] %v4342_v41  ;;  %v4363_v50 = vand.u32 4294901760, %v4331_v37  ;;  %3680 = vmatpush3.msra.mxu0 %v4279_v16  ;;  %v259_v52 = vand.u32 4294901760, %v258_v42  ;;  %v384_v54 = vsub.f32 %v4326_v35, %v6509_v44  ;;  %v6506_v55 = vand.u32 4294901760, %v4353_v45  ;;  %v4497_v34 = vld [vmem:[#allocation7 + $0x10] sm:$0xff]  ;;  %p4197_p10 = pnand %p4196_p9, %p4190_p6 }
  0x3f   :  { %v378_v53 = vand.u32 4294901760, %v377_v43  ;;  %3681 = vmatprep.subr.mxu0 %v4281_v17  ;;  %3708 = vmatprep.subr.mxu1 %v371_v47  ;;  %v266_v57 = vand.u32 4294901760, %v265_v48  ;;  %v272_v58 = vsub.f32 %v4339_v40, %v6508_v49  ;;  %v4379_v59 = vsub.f32 %v84_v13, %v4279_v16  ;;  %v4407_v13 = vld [vmem:[#allocation7 + $0x28] sm:$0xff]  ;;  %v4474_v49 = vld [vmem:[#allocation7 + $0x18] sm:$0xff] }
  0x40   :  { %6793 = vst [vmem:[#allocation19_spill] sm:$0xff] %v4363_v50  ;;  %v4382_v60 = vand.u32 4294901760, %v4355_v46  ;;  %3682 = vmatpush3.msra.mxu0 %v4294_v22  ;;  %3709 = vmatpush3.msra.mxu1 %v259_v52  ;;  %v385_v62 = vand.u32 4294901760, %v384_v54  ;;  %v391_v63 = vsub.f32 %v4353_v45, %v6506_v55  ;;  %v4391_v0 = vsub.f32 %v99_v14, %v4281_v17 }
  0x41   :  { %v4394_v1 = vand.u32 4294901760, %v4365_v51  ;;  %3683 = vmatprep.subr.mxu0 %v4300_v24  ;;  %3710 = vmatprep.subr.mxu1 %v378_v53  ;;  %v273_v6 = vand.u32 4294901760, %v272_v58  ;;  %v6504_v7 = vand.u32 4294901760, %v4379_v59  ;;  %v4402_v8 = vsub.f32 %v4286_v19, %v4294_v22 }
  0x42   :  { %6794 = vst [vmem:[#allocation20_spill] sm:$0xff] %v4382_v60  ;;  %v4405_v12 = vand.u32 4294901760, %v4372_v56  ;;  %3684 = vmatpush3.msra.mxu0 %v4314_v30  ;;  %3711 = vmatpush3.msra.mxu1 %v266_v57  ;;  %v392_v14 = vand.u32 4294901760, %v391_v63  ;;  %v6503_v38 = vand.u32 4294901760, %v4391_v0  ;;  %v4413_v42 = vsub.f32 %v4288_v20, %v4300_v24  ;;  %v4430_v20 = vld [vmem:[#allocation7 + $0xa0] sm:$0xff] }
  0x43   :  { %6795 = vst [vmem:[#allocation21_spill] sm:$0xff] %v4394_v1  ;;  %v4416_v43 = vand.u32 4294901760, %v4384_v61  ;;  %3685 = vmatprep.subr.mxu0 %v4320_v32  ;;  %3712 = vmatprep.subr.mxu1 %v385_v62  ;;  %v279_v19 = vsub.f32 %v4379_v59, %v6504_v7  ;;  %v6505_v47 = vand.u32 4294901760, %v4402_v8  ;;  %v4425_v48 = vsub.f32 %v4290_v21, %v4314_v30 }
  0x44   :  { %6796 = vst [vmem:[#allocation22_spill] sm:$0xff] %v4405_v12  ;;  %v4428_v52 = vand.u32 4294901760, %v4396_v2  ;;  %3686 = vmatpush3.msra.mxu0 %v4329_v36  ;;  %3713 = vmatpush3.msra.mxu1 %v273_v6  ;;  %v398_v53 = vsub.f32 %v4391_v0, %v6503_v38  ;;  %v6507_v54 = vand.u32 4294901760, %v4413_v42  ;;  %v4439_v57 = vsub.f32 %v4305_v26, %v4320_v32  ;;  %v4453_v38 = vld [vmem:[#allocation7 + $0x20] sm:$0xff] }
  0x45   :  { %6797 = vst [vmem:[#allocation23_spill] sm:$0xff] %v4416_v43  ;;  %v4442_v21 = vand.u32 4294901760, %v4407_v13  ;;  %3687 = vmatprep.subr.mxu0 %v4342_v41  ;;  %3714 = vmatprep.subr.mxu1 %v392_v14  ;;  %v280_v58 = vand.u32 4294901760, %v279_v19  ;;  %v286_v62 = vsub.f32 %v4402_v8, %v6505_v47  ;;  %v6510_v63 = vand.u32 4294901760, %v4425_v48  ;;  %v4463_v47 = vld [vmem:[#allocation7 + $0x98] sm:$0xff] }
  0x46   :  { %6798 = vst [vmem:[#allocation24_spill] sm:$0xff] %v4428_v52  ;;  %v4451_v6 = vsub.f32 %v4307_v27, %v4329_v36  ;;  %3688 = vmatpush3.msra.mxu0 %v4363_v50  ;;  %v399_v26 = vand.u32 4294901760, %v398_v53  ;;  %v405_v14 = vsub.f32 %v4413_v42, %v6507_v54  ;;  %v6512_v19 = vand.u32 4294901760, %v4439_v57  ;;  %v69_v36 = vld [vmem:[#allocation2] sm:$0xff] }
  0x47   :  { %6799 = vst [vmem:[#allocation25_spill] sm:$0xff] %v4442_v21  ;;  %v4461_v7 = vand.u32 4294901760, %v4430_v20  ;;  %3715 = vmatpush3.msra.mxu1 %v280_v58  ;;  %3689 = vmatprep.subr.mxu0 %v4382_v60  ;;  %v287_v27 = vand.u32 4294901760, %v286_v62  ;;  %v293_v55 = vsub.f32 %v4425_v48, %v6510_v63  ;;  %v4472_v54 = vsub.f32 %v4309_v28, %v4342_v41 }
  0x48   :  { %v6515_v53 = vand.u32 4294901760, %v4451_v6  ;;  %3716 = vmatprep.subr.mxu1 %v399_v26  ;;  %3690 = vmatpush3.msra.mxu0 %v4394_v1  ;;  %v406_v44 = vand.u32 4294901760, %v405_v14  ;;  %v412_v58 = vsub.f32 %v4439_v57, %v6512_v19  ;;  %v4481_v62 = vand.u32 4294901760, %v4453_v38 }
  0x49   :  { %6800 = vst [vmem:[#allocation26_spill] sm:$0xff] %v4461_v7  ;;  %v4485_v63 = vsub.f32 %v4331_v37, %v4363_v50  ;;  %3717 = vmatpush3.msra.mxu1 %v287_v27  ;;  %3691 = vmatprep.subr.mxu0 %v4405_v12  ;;  %v294_v28 = vand.u32 4294901760, %v293_v55  ;;  %v6519_v14 = vand.u32 4294901760, %v4472_v54  ;;  %v4495_v19 = vand.u32 4294901760, %v4463_v47 }
  0x4a   :  { %6801 = vst [vmem:[#allocation27_spill] sm:$0xff] %v4481_v62  ;;  %v300_v26 = vsub.f32 %v4451_v6, %v6515_v53  ;;  %3718 = vmatprep.subr.mxu1 %v406_v44  ;;  %3692 = vmatpush3.msra.mxu0 %v4416_v43  ;;  %v413_v37 = vand.u32 4294901760, %v412_v58  ;;  %v4503_v55 = vsub.f32 %v4355_v46, %v4382_v60  ;;  %v4506_v33 = vand.u32 4294901760, %v4474_v49  ;;  %v4508_v53 = vld [vmem:[#allocation7 + $0x88] sm:$0xff] }
  0x4b   :  { %6802 = vst [vmem:[#allocation28_spill] sm:$0xff] %v4495_v19  ;;  %v6522_v27 = vand.u32 4294901760, %v4485_v63  ;;  %3719 = vmatpush3.msra.mxu1 %v294_v28  ;;  %3693 = vmatprep.subr.mxu0 %v4428_v52  ;;  %v419_v44 = vsub.f32 %v4472_v54, %v6519_v14  ;;  %v4516_v58 = vsub.f32 %v4365_v51, %v4394_v1  ;;  %v4519_v46 = vand.u32 4294901760, %v4487_v39  ;;  %v4533_v51 = vld [vmem:[#allocation7 + $0x8] sm:$0xff] }
  0x4c   :  { %6803 = vst [vmem:[#allocation29_spill] sm:$0xff] %v4506_v33  ;;  %v301_v29 = vand.u32 4294901760, %v300_v26  ;;  %3720 = vmatprep.subr.mxu1 %v413_v37  ;;  %3694 = vmatpush3.msra.mxu0 %v4442_v21  ;;  %v4528_v60 = vsub.f32 %v4372_v56, %v4405_v12  ;;  %v4531_v14 = vand.u32 4294901760, %v4497_v34  ;;  %v4542_v26 = vand.u32 4294901760, %v4508_v53  ;;  %v4544_v56 = vld [vmem:[#allocation7 + $0x80] sm:$0xff] }
  0x4d   :  { %6804 = vst [vmem:[#allocation30_spill] sm:$0xff] %v4519_v46  ;;  %v307_v28 = vsub.f32 %v4485_v63, %v6522_v27  ;;  %3695 = vmatprep.subr.mxu0 %v4461_v7  ;;  %v420_v37 = vand.u32 4294901760, %v419_v44  ;;  %v4539_v27 = vsub.f32 %v4384_v61, %v4416_v43  ;;  %v6808_v50 = vand.u32 4294901760, %v4503_v55  ;;  %v4567_v44 = vld [vmem:[#allocation7] sm:$0xff] }
  0x4e   :  { %6805 = vst [vmem:[#allocation31_spill] sm:$0xff] %v4531_v14  ;;  %3721 = vmatpush3.msra.mxu1 %v301_v29  ;;  %6807 = vst [vmem:[#allocation33_spill] sm:$0xff] %v4542_v26  ;;  %3696 = vmatpush3.msra.mxu0 %v4481_v62  ;;  %v4553_v1 = vsub.f32 %v4396_v2, %v4428_v52  ;;  %v6810_v61 = vand.u32 4294901760, %v4516_v58  ;;  %v4575_v41 = vand.u32 4294901760, %v4544_v56  ;;  %v4591_v30 = vand.u32 4294901760, %v4567_v44 }
  0x4f   :  { %6806 = vst [vmem:[#allocation32_spill] sm:$0xff] %v4539_v27  ;;  %v308_v12 = vand.u32 4294901760, %v307_v28  ;;  %v426_v29 = vsub.f32 %v4503_v55, %v6808_v50  ;;  %3722 = vmatprep.subr.mxu1 %v420_v37  ;;  %3697 = vmatprep.subr.mxu0 %v4495_v19  ;;  %v4561_v28 = vand.u32 4294901760, %v4533_v51  ;;  %v4565_v50 = vsub.f32 %v4407_v13, %v4442_v21 }
  0x50   :  { %6809 = vst [vmem:[#allocation34_spill] sm:$0xff] %v4553_v1  ;;  %v314_v43 = vsub.f32 %v4516_v58, %v6810_v61  ;;  %3698 = vmatpush3.msra.mxu0 %v4506_v33  ;;  %v6812_v37 = vand.u32 4294901760, %v4528_v60  ;;  %v6543_v61 = vand.u32 4294901760, %v4553_v1  ;;  %v6813_v13 = vand.u32 4294901760, %v4539_v27 }
  0x51   :  { %6811 = vst [vmem:[#allocation35_spill] sm:$0xff] %v4561_v28  ;;  %3723 = vmatpush3.msra.mxu1 %v308_v12  ;;  %v427_v2 = vand.u32 4294901760, %v426_v29  ;;  %3699 = vmatprep.subr.mxu0 %v4519_v46  ;;  %v4584_v21 = vsub.f32 %v4430_v20, %v4461_v7  ;;  %v6814_v20 = vand.u32 4294901760, %v4565_v50  ;;  %v138_v7 = vcombine.high %v69_v36, %v69_v36 }
  0x52   :  { %v433_v52 = vsub.f32 %v4528_v60, %v6812_v37  ;;  %v315_v32 = vand.u32 4294901760, %v314_v43  ;;  %v321_v12 = vsub.f32 %v4539_v27, %v6813_v13  ;;  %3700 = vmatpush3.msra.mxu0 %v4531_v14  ;;  %v440_v43 = vsub.f32 %v4553_v1, %v6543_v61 }
  0x53   :  { %3724 = vmatprep.subr.mxu1 %v427_v2  ;;  %v4595_v13 = vsub.f32 %v4453_v38, %v4481_v62  ;;  %3701 = vmatprep.subr.mxu0 %v4542_v26  ;;  %v6548_v2 = vand.u32 4294901760, %v4584_v21  ;;  %v4604_v27 = vand.u32 4294901760, %v69_v36 }
  0x54   :  { %v434_v37 = vand.u32 4294901760, %v433_v52  ;;  %3725 = vmatpush3.msra.mxu1 %v315_v32  ;;  %v322_v29 = vand.u32 4294901760, %v321_v12  ;;  %v328_v52 = vsub.f32 %v4565_v50, %v6814_v20  ;;  %v441_v61 = vand.u32 4294901760, %v440_v43  ;;  %3702 = vmatpush3.msra.mxu0 %v4561_v28 }
  0x55   :  { %v6549_v1 = vand.u32 4294901760, %v4595_v13  ;;  %6815 = vst [vmem:[#allocation36_spill] sm:$0xff] %v4604_v27  ;;  %v4608_v32 = vsub.f32 %v4463_v47, %v4495_v19  ;;  %3703 = vmatprep.subr.mxu0 %v4575_v41  ;;  %v447_v12 = vsub.f32 %v4584_v21, %v6548_v2  ;;  %v4618_v43 = vsub.f32 %v4474_v49, %v4506_v33 }
  0x56   :  { %3726 = vmatprep.subr.mxu1 %v434_v37  ;;  %v329_v38 = vand.u32 4294901760, %v328_v52  ;;  %v4614_v37 = vand.u32 4294901760, %v138_v7  ;;  %3704 = vmatpush3.msra.mxu0 %v4591_v30  ;;  %v4626_v20 = vsub.f32 %v69_v36, %v4604_v27  ;;  %v4630_v52 = vsub.f32 %v4487_v39, %v4519_v46 }
  0x57   :  { %3727 = vmatpush3.msra.mxu1 %v322_v29  ;;  %v335_v47 = vsub.f32 %v4595_v13, %v6549_v1  ;;  %v448_v2 = vand.u32 4294901760, %v447_v12  ;;  %3743 = vmatprep.subr.mxu0 %v4284_v18  ;;  %v4639_v1 = vsub.f32 %v4497_v34, %v4531_v14  ;;  %v6817_v36 = vand.u32 4294901760, %v4608_v32 }
  0x58   :  { %6816 = vst [vmem:[#allocation37_spill] sm:$0xff] %v4614_v37  ;;  %3728 = vmatprep.subr.mxu1 %v441_v61  ;;  %v4633_v49 = vsub.f32 %v138_v7, %v4614_v37  ;;  %v6554_v61 = vand.u32 4294901760, %v4618_v43  ;;  %v6557_v39 = vand.u32 4294901760, %v4626_v20  ;;  %479 = vmatprep.mubr.f32.mxu1 %v4614_v37  ;;  %v4664_v37 = vsub.f32 %v4533_v51, %v4561_v28 }
  0x59   :  { %3729 = vmatpush3.msra.mxu1 %v329_v38  ;;  %v336_v29 = vand.u32 4294901760, %v335_v47  ;;  %v454_v33 = vsub.f32 %v4608_v32, %v6817_v36  ;;  %v4654_v47 = vsub.f32 %v4508_v53, %v4542_v26  ;;  %v4676_v51 = vsub.f32 %v4544_v56, %v4575_v41 }
  0x5a   :  { %3730 = vmatprep.subr.mxu1 %v448_v2  ;;  %v342_v12 = vsub.f32 %v4618_v43, %v6554_v61  ;;  %v247_v38 = vsub.f32 %v4626_v20, %v6557_v39  ;;  %v6818_v2 = vand.u32 4294901760, %v4630_v52  ;;  %v6819_v61 = vand.u32 4294901760, %v4633_v49 }
  0x5b   :  { %3731 = vmatpush3.msra.mxu1 %v336_v29  ;;  %v455_v36 = vand.u32 4294901760, %v454_v33  ;;  %v6820_v29 = vand.u32 4294901760, %v4639_v1  ;;  %v6567_v26 = vand.u32 4294901760, %v4654_v47 }
  0x5c   :  { %v461_v7 = vsub.f32 %v4630_v52, %v6818_v2  ;;  %v241_v34 = vsub.f32 %v4633_v49, %v6819_v61  ;;  %v343_v53 = vand.u32 4294901760, %v342_v12  ;;  %v248_v39 = vand.u32 4294901760, %v247_v38 }
  0x5d   :  { %v349_v33 = vsub.f32 %v4639_v1, %v6820_v29  ;;  %3732 = vmatprep.subr.mxu1 %v455_v36  ;;  %v6566_v2 = vand.u32 4294901760, %v4664_v37  ;;  %v468_v61 = vsub.f32 %v4654_v47, %v6567_v26  ;;  %v4683_v12 = vsub.f32 %v4567_v44, %v4591_v30  ;;  %v6824_v29 = vld [vmem:[#allocation16_spill] sm:$0xff]  ;;  %v6837_v26 = vld [vmem:[#allocation29_spill] sm:$0xff] }
  0x5e   :  { %v462_v14 = vand.u32 4294901760, %v461_v7  ;;  %v242_v28 = vand.u32 4294901760, %v241_v34  ;;  %3733 = vmatpush3.msra.mxu1 %v343_v53  ;;  %v6565_v7 = vand.u32 4294901760, %v4676_v51 }
  0x5f   :  { %v350_v46 = vand.u32 4294901760, %v349_v33  ;;  %6821 = vst [vmem:[#allocation38_spill] sm:$0xff] %v4683_v12  ;;  %v356_v38 = vsub.f32 %v4664_v37, %v6566_v2  ;;  %v469_v56 = vand.u32 4294901760, %v468_v61  ;;  %v6564_v34 = vand.u32 4294901760, %v4683_v12  ;;  %v6825_v33 = vld [vmem:[#allocation34_spill] sm:$0xff]  ;;  %v6826_v61 = vld [vmem:[#allocation17_spill] sm:$0xff] }
  0x60   :  { %3734 = vmatprep.subr.mxu1 %v462_v14  ;;  %243 = vmatprep.mubr.f32.mxu0 %v242_v28  ;;  %v475_v53 = vsub.f32 %v4676_v51, %v6565_v7  ;;  %v6822_v28 = vld [vmem:[#allocation15_spill] sm:$0xff]  ;;  %v6835_v7 = vld [vmem:[#allocation26_spill] sm:$0xff]  ;;  %v6836_v2 = vand.u32 4294901760, %v4284_v18  ;;  %v6844_v18 = vand.u32 4294901760, %v4326_v35 }
  0x61   :  { %3735 = vmatpush3.msra.mxu1 %v350_v46  ;;  %249 = vmatmul.mubr.f32.vlgmr.msra.gmra.mxu0 %v248_v39  ;;  %v357_v36 = vand.u32 4294901760, %v356_v38  ;;  %v363_v14 = vsub.f32 %v4683_v12, %v6564_v34  ;;  %v6823_v39 = vld [vmem:[#allocation32_spill] sm:$0xff]  ;;  %v6827_v38 = vld [vmem:[#allocation18_spill] sm:$0xff]  ;;  %v6834_v34 = vld [vmem:[#allocation25_spill] sm:$0xff] }
  0x62   :  { %3744 = vmatpush3.msra.mxu0 %v4297_v23  ;;  %3736 = vmatprep.subr.mxu1 %v469_v56  ;;  %v476_v46 = vand.u32 4294901760, %v475_v53  ;;  %v6828_v56 = vld [vmem:[#allocation19_spill] sm:$0xff]  ;;  %v6830_v53 = vld [vmem:[#allocation21_spill] sm:$0xff] }
  0x63   :  { %3745 = vmatprep.subr.mxu0 %v4303_v25  ;;  %3737 = vmatpush3.msra.mxu1 %v357_v36  ;;  %v364_v44 = vand.u32 4294901760, %v363_v14  ;;  %v6829_v36 = vld [vmem:[#allocation20_spill] sm:$0xff]  ;;  %v6831_v14 = vld [vmem:[#allocation22_spill] sm:$0xff] }
  0x64   :  { %3746 = vmatpush3.msra.mxu0 %v4317_v31  ;;  %616 = vmatprep.mubr.f32.mxu0 %v4633_v49 }
  0x65   :  { %3747 = vmatprep.subr.mxu0 %v4326_v35  ;;  %3738 = vmatprep.subr.mxu1 %v476_v46  ;;  %v6832_v46 = vld [vmem:[#allocation23_spill] sm:$0xff]  ;;  %v6850_v35 = vand.u32 4294901760, %v4626_v20 }
  0x66   :  { %3748 = vmatpush3.msra.mxu0 %v4339_v40  ;;  %3739 = vmatpush3.msra.mxu1 %v364_v44  ;;  %v6833_v44 = vld [vmem:[#allocation24_spill] sm:$0xff] }
  0x67   :  { %3749 = vmatprep.subr.mxu0 %v4353_v45  ;;  %481 = vmatmul.mubr.f32.vlgmr.msra.gmra.mxu1 %v4604_v27  ;;  %v6838_v27 = vand.u32 4294901760, %v4297_v23  ;;  %v6846_v23 = vand.u32 4294901760, %v4339_v40  ;;  %v6852_v40 = vand.u32 4294901760, %v4402_v8 }
  0x68   :  { %3750 = vmatpush3.msra.mxu0 %v4379_v59  ;;  %3778 = vmatprep.subr.mxu1 %v4264_v3 }
  0x69   :  { %3751 = vmatprep.subr.mxu0 %v4391_v0  ;;  %3779 = vmatpush3.msra.mxu1 %v4266_v4 }
  0x6a   :  { %3752 = vmatpush3.msra.mxu0 %v4402_v8  ;;  %3780 = vmatprep.subr.mxu1 %v4268_v5  ;;  %v6856_v8 = vand.u32 4294901760, %v4451_v6 }
  0x6b   :  { %3753 = vmatprep.subr.mxu0 %v4413_v42  ;;  %3781 = vmatpush3.msra.mxu1 %v4270_v9 }
  0x6c   :  { %3754 = vmatpush3.msra.mxu0 %v4425_v48  ;;  %3782 = vmatprep.subr.mxu1 %v4272_v10 }
  0x6d   :  { %3755 = vmatprep.subr.mxu0 %v4439_v57  ;;  %3783 = vmatpush3.msra.mxu1 %v4274_v11 }
  0x6e   :  { %3756 = vmatpush3.msra.mxu0 %v4451_v6  ;;  %3784 = vmatprep.subr.mxu1 %v4277_v15 }
  0x6f   :  { %3757 = vmatprep.subr.mxu0 %v4472_v54  ;;  %3785 = vmatpush3.msra.mxu1 %v4279_v16 }
  0x70   :  { %3758 = vmatpush3.msra.mxu0 %v4485_v63  ;;  %3786 = vmatprep.subr.mxu1 %v4281_v17 }
  0x71   :  { %3759 = vmatprep.subr.mxu0 %v4503_v55  ;;  %3787 = vmatpush3.msra.mxu1 %v4294_v22 }
  0x72   :  { %3760 = vmatpush3.msra.mxu0 %v4516_v58  ;;  %3788 = vmatprep.subr.mxu1 %v4300_v24 }
  0x73   :  { %3761 = vmatprep.subr.mxu0 %v4528_v60  ;;  %3789 = vmatpush3.msra.mxu1 %v6822_v28 }
  0x74   :  { %3762 = vmatpush3.msra.mxu0 %v6823_v39  ;;  %3790 = vmatprep.subr.mxu1 %v6824_v29 }
  0x75   :  { %3763 = vmatprep.subr.mxu0 %v6825_v33  ;;  %3791 = vmatpush3.msra.mxu1 %v6826_v61 }
  0x76   :  { %3764 = vmatpush3.msra.mxu0 %v4565_v50  ;;  %3792 = vmatprep.subr.mxu1 %v6827_v38 }
  0x77   :  { %3765 = vmatprep.subr.mxu0 %v4584_v21  ;;  %3793 = vmatpush3.msra.mxu1 %v6828_v56 }
  0x78   :  { %3766 = vmatpush3.msra.mxu0 %v4595_v13  ;;  %3794 = vmatprep.subr.mxu1 %v6829_v36 }
  0x79   :  { %3767 = vmatprep.subr.mxu0 %v4608_v32  ;;  %3795 = vmatpush3.msra.mxu1 %v6830_v53 }
  0x7a   :  { %3768 = vmatpush3.msra.mxu0 %v4618_v43  ;;  %3796 = vmatprep.subr.mxu1 %v6831_v14 }
  0x7b   :  { %3769 = vmatprep.subr.mxu0 %v4630_v52  ;;  %3797 = vmatpush3.msra.mxu1 %v6832_v46 }
  0x7c   :  { %3770 = vmatpush3.msra.mxu0 %v4639_v1  ;;  %3798 = vmatprep.subr.mxu1 %v6833_v44 }
  0x7d   :  { %3771 = vmatprep.subr.mxu0 %v4654_v47  ;;  %3799 = vmatpush3.msra.mxu1 %v6834_v34  ;;  %v6839_v34 = vld [vmem:[#allocation30_spill] sm:$0xff] }
  0x7e   :  { %3772 = vmatpush3.msra.mxu0 %v4664_v37  ;;  %3800 = vmatprep.subr.mxu1 %v6835_v7  ;;  %v6840_v7 = vand.u32 4294901760, %v4303_v25  ;;  %v6847_v25 = vand.u32 4294901760, %v4353_v45  ;;  %v6853_v45 = vand.u32 4294901760, %v4413_v42  ;;  %v118_v42 = vld [vmem:[#allocation7 + $0x170] sm:$0xff] }
  0x7f   :  { %3773 = vmatprep.subr.mxu0 %v4676_v51  ;;  %3801 = vmatpush3.msra.mxu1 %v4481_v62  ;;  %v6841_v62 = vld [vmem:[#allocation31_spill] sm:$0xff]  ;;  %v4813_v6 = vand.u32 4294901760, %v118_v42 }
  0x80   :  { %3774 = vmatpush3.msra.mxu0 %v4683_v12  ;;  %3802 = vmatprep.subr.mxu1 %v4495_v19  ;;  %v6842_v12 = vand.u32 4294901760, %v4317_v31  ;;  %v6843_v19 = vld [vmem:[#allocation33_spill] sm:$0xff]  ;;  %v6848_v31 = vand.u32 4294901760, %v4633_v49 }
  0x81   :  { %619 = vmatmul.mubr.f32.vlgmr.msra.gmra.mxu0 %v4626_v20  ;;  %3813 = vmatprep.subr.mxu0 %v6836_v2  ;;  %v6845_v2 = vld [vmem:[#allocation35_spill] sm:$0xff]  ;;  %6860 = vst [vmem:[#allocation15_spill] sm:$0xff] %v4813_v6  ;;  %v116_v49 = vld [vmem:[#allocation7 + $0x160] sm:$0xff] }
  0x82   :  { %3803 = vmatpush3.msra.mxu1 %v6837_v26  ;;  %3814 = vmatpush3.msra.mxu0 %v6838_v27  ;;  %v6849_v27 = vand.u32 4294901760, %v4379_v59  ;;  %v6854_v59 = vand.u32 4294901760, %v4425_v48 }
  0x83   :  { %3804 = vmatprep.subr.mxu1 %v6839_v34  ;;  %3815 = vmatprep.subr.mxu0 %v6840_v7 }
  0x84   :  { %3805 = vmatpush3.msra.mxu1 %v6841_v62  ;;  %3816 = vmatpush3.msra.mxu0 %v6842_v12  ;;  %v6851_v12 = vand.u32 4294901760, %v4391_v0  ;;  %v6855_v0 = vand.u32 4294901760, %v4439_v57  ;;  %v134_v57 = vld [vmem:[#allocation7 + $0x1f0] sm:$0xff] }
  0x85   :  { %3806 = vmatprep.subr.mxu1 %v6843_v19  ;;  %3817 = vmatprep.subr.mxu0 %v6844_v18  ;;  %v4827_v20 = vand.u32 4294901760, %v134_v57  ;;  %v131_v18 = vld [vmem:[#allocation7 + $0x1d8] sm:$0xff] }
  0x86   :  { %3807 = vmatpush3.msra.mxu1 %v6845_v2  ;;  %3818 = vmatpush3.msra.mxu0 %v6846_v23  ;;  %v6870_v23 = vand.u32 4294901760, %v4595_v13 }
  0x87   :  { %3808 = vmatprep.subr.mxu1 %v4575_v41  ;;  %3819 = vmatprep.subr.mxu0 %v6847_v25  ;;  %v4853_v25 = vand.u32 4294901760, %v116_v49 }
  0x88   :  { %3809 = vmatpush3.msra.mxu1 %v4591_v30  ;;  %723 = vmatprep.mubr.f32.mxu1 %v6848_v31  ;;  %v4857_v31 = vsub.f32 %v134_v57, %v4827_v20  ;;  %v6883_v57 = vand.u32 4294901760, %v4676_v51  ;;  %v108_v51 = vld [vmem:[#allocation7 + $0x120] sm:$0xff] }
  0x89   :  { %3820 = vmatpush3.msra.mxu0 %v6849_v27  ;;  %727 = vmatmul.mubr.f32.vlgmr.msra.gmra.mxu1 %v6850_v35  ;;  %6871 = vst [vmem:[#allocation17_spill] sm:$0xff] %v4853_v25  ;;  %v114_v27 = vld [vmem:[#allocation7 + $0x150] sm:$0xff]  ;;  %v6873_v35 = vand.u32 4294901760, %v4618_v43  ;;  %v6877_v43 = vand.u32 4294901760, %v4639_v1 }
  0x8a   :  { %3821 = vmatprep.subr.mxu0 %v6851_v12  ;;  %3848 = vmatprep.subr.mxu1 %v4264_v3  ;;  %v119_v3 = vld [vmem:[#allocation7 + $0x178] sm:$0xff] }
  0x8b   :  { %3822 = vmatpush3.msra.mxu0 %v6852_v40  ;;  %3849 = vmatpush3.msra.mxu1 %v4266_v4  ;;  %v135_v4 = vld [vmem:[#allocation7 + $0x1f8] sm:$0xff]  ;;  %v4806_v48 = vand.u32 4294901760, %v119_v3  ;;  %v130_v40 = vld [vmem:[#allocation7 + $0x1d0] sm:$0xff] }
  0x8c   :  { %3823 = vmatprep.subr.mxu0 %v6853_v45  ;;  %3850 = vmatprep.subr.mxu1 %v4268_v5  ;;  %v6857_v5 = vand.u32 4294901760, %v4472_v54  ;;  %v6861_v54 = vand.u32 4294901760, %v4516_v58  ;;  %v132_v58 = vld [vmem:[#allocation7 + $0x1e0] sm:$0xff] }
  0x8d   :  { %3824 = vmatpush3.msra.mxu0 %v6854_v59  ;;  %3851 = vmatpush3.msra.mxu1 %v4270_v9  ;;  %v6858_v9 = vand.u32 4294901760, %v4485_v63  ;;  %v117_v63 = vld [vmem:[#allocation7 + $0x168] sm:$0xff] }
  0x8e   :  { %3825 = vmatprep.subr.mxu0 %v6855_v0  ;;  %3852 = vmatprep.subr.mxu1 %v4272_v10  ;;  %v6859_v10 = vand.u32 4294901760, %v4503_v55  ;;  %v6863_v55 = vand.u32 4294901760, %v6823_v39  ;;  %v4843_v39 = vand.u32 4294901760, %v117_v63  ;;  %v4895_v0 = vand.u32 4294901760, %v114_v27 }
  0x8f   :  { %3826 = vmatpush3.msra.mxu0 %v6856_v8  ;;  %3853 = vmatpush3.msra.mxu1 %v4274_v11  ;;  %v4811_v11 = vand.u32 4294901760, %v135_v4  ;;  %v113_v8 = vld [vmem:[#allocation7 + $0x148] sm:$0xff] }
  0x90   :  { %3827 = vmatprep.subr.mxu0 %v6857_v5  ;;  %3854 = vmatprep.subr.mxu1 %v4277_v15  ;;  %v133_v15 = vld [vmem:[#allocation7 + $0x1e8] sm:$0xff]  ;;  %6867 = vst [vmem:[#allocation16_spill] sm:$0xff] %v4843_v39  ;;  %v4871_v12 = vsub.f32 %v117_v63, %v4843_v39  ;;  %6878 = vst [vmem:[#allocation20_spill] sm:$0xff] %v4895_v0  ;;  %v4928_v63 = vand.u32 4294901760, %v113_v8 }
  0x91   :  { %3828 = vmatpush3.msra.mxu0 %v6858_v9  ;;  %3855 = vmatpush3.msra.mxu1 %v4279_v16  ;;  %v6862_v16 = vand.u32 4294901760, %v4528_v60  ;;  %v4833_v60 = vsub.f32 %v118_v42, %v4813_v6  ;;  %v4838_v7 = vsub.f32 %v135_v4, %v4811_v11  ;;  %v6879_v4 = vand.u32 4294901760, %v4654_v47  ;;  %v6882_v47 = vld [vmem:[#allocation25_spill] sm:$0xff] }
  0x92   :  { %3829 = vmatprep.subr.mxu0 %v6859_v10  ;;  %3856 = vmatprep.subr.mxu1 %v4281_v17  ;;  %v4825_v17 = vsub.f32 %v119_v3, %v4806_v48  ;;  %v129_v3 = vld [vmem:[#allocation7 + $0x1c8] sm:$0xff]  ;;  %v6881_v9 = vand.u32 4294901760, %v4664_v37  ;;  %6886 = vst [vmem:[#allocation23_spill] sm:$0xff] %v4928_v63 }
  0x93   :  { %3830 = vmatpush3.msra.mxu0 %v6861_v54  ;;  %3857 = vmatpush3.msra.mxu1 %v4294_v22  ;;  %v6864_v22 = vand.u32 4294901760, %v6825_v33  ;;  %v6868_v33 = vand.u32 4294901760, %v4584_v21  ;;  %v6872_v21 = vand.u32 4294901760, %v4608_v32  ;;  %v6575_v13 = vand.u32 4294901760, %v4833_v60  ;;  %v6884_v54 = vld [vmem:[#allocation26_spill] sm:$0xff] }
  0x94   :  { %3831 = vmatprep.subr.mxu0 %v6862_v16  ;;  %3858 = vmatprep.subr.mxu1 %v4300_v24  ;;  %v4835_v24 = vand.u32 4294901760, %v133_v15  ;;  %v4873_v32 = vand.u32 4294901760, %v131_v18  ;;  %v4926_v16 = vand.u32 4294901760, %v129_v3 }
  0x95   :  { %3832 = vmatpush3.msra.mxu0 %v6863_v55  ;;  %3859 = vmatpush3.msra.mxu1 %v6822_v28  ;;  %v6866_v28 = vand.u32 4294901760, %v4565_v50  ;;  %v115_v50 = vld [vmem:[#allocation7 + $0x158] sm:$0xff]  ;;  %v4910_v42 = vsub.f32 %v4833_v60, %v6575_v13  ;;  %v112_v55 = vld [vmem:[#allocation7 + $0x140] sm:$0xff] }
  0x96   :  { %3833 = vmatprep.subr.mxu0 %v6864_v22  ;;  %3860 = vmatprep.subr.mxu1 %v6824_v29  ;;  %6865 = vst [vmem:[#allocation32_spill] sm:$0xff] %v4835_v24  ;;  %v4848_v29 = vand.u32 4294901760, %v132_v58  ;;  %6874 = vst [vmem:[#allocation18_spill] sm:$0xff] %v4873_v32  ;;  %v4878_v45 = vand.u32 4294901760, %v115_v50  ;;  %v4918_v10 = vsub.f32 %v131_v18, %v4873_v32  ;;  %v6887_v22 = vld [vmem:[#allocation38_spill] sm:$0xff] }
  0x97   :  { %3834 = vmatpush3.msra.mxu0 %v6866_v28  ;;  %3861 = vmatpush3.msra.mxu1 %v6826_v61  ;;  %v6578_v61 = vand.u32 4294901760, %v4825_v17  ;;  %6885 = vst [vmem:[#allocation22_spill] sm:$0xff] %v4926_v16  ;;  %v6889_v28 = vld [vmem:[#allocation37_spill] sm:$0xff]  ;;  %v4941_v18 = vsub.f32 %v114_v27, %v4895_v0 }
  0x98   :  { %3835 = vmatprep.subr.mxu0 %v6868_v33  ;;  %3862 = vmatprep.subr.mxu1 %v6827_v38  ;;  %6869 = vst [vmem:[#allocation34_spill] sm:$0xff] %v4848_v29  ;;  %v6580_v38 = vand.u32 4294901760, %v4838_v7  ;;  %6876 = vst [vmem:[#allocation19_spill] sm:$0xff] %v4878_v45  ;;  %v4881_v59 = vsub.f32 %v132_v58, %v4848_v29  ;;  %v111_v58 = vld [vmem:[#allocation7 + $0x138] sm:$0xff] }
  0x99   :  { %3836 = vmatpush3.msra.mxu0 %v6870_v23  ;;  %3863 = vmatpush3.msra.mxu1 %v6828_v56  ;;  %v4865_v56 = vsub.f32 %v133_v15, %v4835_v24  ;;  %v4924_v15 = vsub.f32 %v115_v50, %v4878_v45  ;;  %v128_v23 = vld [vmem:[#allocation7 + $0x1c0] sm:$0xff] }
  0x9a   :  { %3837 = vmatprep.subr.mxu0 %v6872_v21  ;;  %3864 = vmatprep.subr.mxu1 %v6829_v36  ;;  %v6875_v36 = vand.u32 4294901760, %v4630_v52  ;;  %v4892_v52 = vsub.f32 %v4825_v17, %v6578_v61  ;;  %v4903_v1 = vsub.f32 %v4838_v7, %v6580_v38  ;;  %v6577_v37 = vand.u32 4294901760, %v4881_v59  ;;  %v6890_v21 = vld [vmem:[#allocation27_spill] sm:$0xff]  ;;  %v109_v38 = vld [vmem:[#allocation7 + $0x128] sm:$0xff] }
  0x9b   :  { %3838 = vmatpush3.msra.mxu0 %v6873_v35  ;;  %3865 = vmatpush3.msra.mxu1 %v6830_v53  ;;  %v4887_v53 = vsub.f32 %v116_v49, %v4853_v25  ;;  %v6574_v5 = vand.u32 4294901760, %v4865_v56  ;;  %v6888_v49 = vand.u32 4294901760, %v6887_v22  ;;  %v6891_v35 = vld [vmem:[#allocation36_spill] sm:$0xff]  ;;  %v6581_v22 = vand.u32 4294901760, %v4918_v10 }
  0x9c   :  { %3839 = vmatprep.subr.mxu0 %v6875_v36  ;;  %3866 = vmatprep.subr.mxu1 %v6831_v14  ;;  %v6576_v14 = vand.u32 4294901760, %v4857_v31  ;;  %v125_v36 = vld [vmem:[#allocation7 + $0x1a8] sm:$0xff] }
  0x9d   :  { %3840 = vmatpush3.msra.mxu0 %v6877_v43  ;;  %3867 = vmatpush3.msra.mxu1 %v6832_v46  ;;  %v4905_v46 = vand.u32 4294901760, %v130_v40  ;;  %v6579_v50 = vand.u32 4294901760, %v4887_v53 }
  0x9e   :  { %3841 = vmatprep.subr.mxu0 %v6879_v4  ;;  %3868 = vmatprep.subr.mxu1 %v6833_v44  ;;  %v6573_v44 = vand.u32 4294901760, %v4871_v12  ;;  %v4938_v33 = vsub.f32 %v4857_v31, %v6576_v14  ;;  %v4951_v4 = vsub.f32 %v4865_v56, %v6574_v5  ;;  %v6582_v5 = vand.u32 4294901760, %v4924_v15  ;;  %v126_v14 = vld [vmem:[#allocation7 + $0x1b0] sm:$0xff] }
  0x9f   :  { %6880 = vst [vmem:[#allocation21_spill] sm:$0xff] %v4905_v46  ;;  %3842 = vmatpush3.msra.mxu0 %v6881_v9  ;;  %3869 = vmatpush3.msra.mxu1 %v6882_v47  ;;  %v4953_v9 = vld [vmem:[#allocation7 + $0x1b8] sm:$0xff]  ;;  %v4956_v27 = vsub.f32 %v130_v40, %v4905_v46  ;;  %v4973_v40 = vsub.f32 %v113_v8, %v4928_v63 }
  0xa0   :  { %3843 = vmatprep.subr.mxu0 %v6883_v57  ;;  %3870 = vmatprep.subr.mxu1 %v6884_v54  ;;  %v6892_v47 = vld [vmem:[#allocation28_spill] sm:$0xff]  ;;  %v4963_v57 = vsub.f32 %v4871_v12, %v6573_v44  ;;  %v4965_v54 = vand.u32 4294901760, %v112_v55  ;;  %v4980_v44 = vsub.f32 %v4881_v59, %v6577_v37  ;;  %v4989_v8 = vsub.f32 %v4887_v53, %v6579_v50 }
  0xa1   :  { %3844 = vmatpush3.msra.mxu0 %v6888_v49  ;;  %893 = vmatprep.mubr.f32.mxu0 %v6889_v28  ;;  %v4968_v49 = vand.u32 4294901760, %v111_v58  ;;  %6895 = vst [vmem:[#allocation30_spill] sm:$0xff] %v4973_v40  ;;  %v4992_v13 = vand.u32 4294901760, %v4953_v9  ;;  %v4995_v37 = vsub.f32 %v129_v3, %v4926_v16  ;;  %v5026_v3 = vand.u32 4294901760, %v126_v14 }
  0xa2   :  { %3871 = vmatpush3.msra.mxu1 %v6890_v21  ;;  %895 = vmatmul.mubr.f32.vlgmr.msra.gmra.mxu0 %v6891_v35  ;;  %6893 = vst [vmem:[#allocation24_spill] sm:$0xff] %v4965_v54  ;;  %v110_v21 = vld [vmem:[#allocation7 + $0x130] sm:$0xff]  ;;  %v5008_v43 = vsub.f32 %v112_v55, %v4965_v54  ;;  %v5024_v55 = vsub.f32 %v4924_v15, %v6582_v5  ;;  %v5037_v50 = vand.u32 4294901760, %v109_v38 }
  0xa3   :  { %3872 = vmatprep.subr.mxu1 %v6892_v47  ;;  %3883 = vmatprep.subr.mxu0 %v4811_v11  ;;  %6894 = vst [vmem:[#allocation29_spill] sm:$0xff] %v4968_v49  ;;  %v4975_v47 = vand.u32 4294901760, %v128_v23  ;;  %6897 = vst [vmem:[#allocation33_spill] sm:$0xff] %v4992_v13  ;;  %v5001_v61 = vand.u32 4294901760, %v110_v21 }
  0xa4   :  { %3873 = vmatpush3.msra.mxu1 %v6837_v26  ;;  %3884 = vmatpush3.msra.mxu0 %v4806_v48  ;;  %v1240_v26 = vand.u32 4294901760, %v4938_v33  ;;  %6899 = vst [vmem:[#allocation25_spill] sm:$0xff] %v5008_v43  ;;  %6900 = vst [vmem:[#allocation26_spill] sm:$0xff] %v5026_v3  ;;  %v124_v33 = vld [vmem:[#allocation7 + $0x1a0] sm:$0xff]  ;;  %v1149_v5 = vand.u32 4294901760, %v5024_v55  ;;  %v5085_v55 = vsub.f32 %v109_v38, %v5037_v50 }
  0xa5   :  { %6896 = vst [vmem:[#allocation31_spill] sm:$0xff] %v4975_v47  ;;  %3874 = vmatprep.subr.mxu1 %v6839_v34  ;;  %3885 = vmatprep.subr.mxu0 %v4827_v20  ;;  %6898 = vst [vmem:[#allocation35_spill] sm:$0xff] %v5001_v61  ;;  %v5016_v34 = vsub.f32 %v111_v58, %v4968_v49  ;;  %v5031_v58 = vld [vmem:[#allocation2 + $0x8] sm:$0xff]  ;;  %v5100_v38 = vsub.f32 %v126_v14, %v5026_v3  ;;  %v6915_v14 = vand.u32 4294901760, %v4951_v4 }
  0xa6   :  { %3875 = vmatpush3.msra.mxu1 %v6841_v62  ;;  %3886 = vmatpush3.msra.mxu0 %v4813_v6  ;;  %v5013_v62 = vsub.f32 %v4918_v10, %v6581_v22  ;;  %v5029_v22 = vsub.f32 %v128_v23, %v4975_v47  ;;  %6902 = vst [vmem:[#allocation37_spill] sm:$0xff] %v5037_v50  ;;  %v6903_v23 = vand.u32 4294901760, %v4956_v27  ;;  %v6913_v6 = vand.u32 4294901760, %v5008_v43 }
  0xa7   :  { %3876 = vmatprep.subr.mxu1 %v6843_v19  ;;  %3887 = vmatprep.subr.mxu0 %v4835_v24  ;;  %v5069_v24 = vand.u32 4294901760, %v124_v33 }
  0xa8   :  { %3877 = vmatpush3.msra.mxu1 %v6845_v2  ;;  %3888 = vmatpush3.msra.mxu0 %v4843_v39  ;;  %6901 = vst [vmem:[#allocation38_spill] sm:$0xff] %v5029_v22  ;;  %v5045_v39 = vsub.f32 %v4956_v27, %v6903_v23  ;;  %v6904_v2 = vand.u32 4294901760, %v4941_v18  ;;  %v6908_v23 = vand.u32 4294901760, %v4892_v52 }
  0xa9   :  { %3878 = vmatprep.subr.mxu1 %v4575_v41  ;;  %3889 = vmatprep.subr.mxu0 %v4848_v29  ;;  %v5048_v41 = vsub.f32 %v110_v21, %v5001_v61  ;;  %v5055_v29 = vand.u32 4294901760, %v108_v51  ;;  %v139_v21 = vcombine.high %v5031_v58, %v5031_v58 }
  0xaa   :  { %3879 = vmatpush3.msra.mxu1 %v4591_v30  ;;  %997 = vmatprep.mubr.f32.mxu1 %v6889_v28  ;;  %v5053_v19 = vsub.f32 %v4941_v18, %v6904_v2  ;;  %v1261_v30 = vand.u32 4294901760, %v5013_v62  ;;  %v5060_v28 = vand.u32 4294901760, %v125_v36  ;;  %v6907_v2 = vand.u32 4294901760, %v4903_v1 }
  0xab   :  { %6905 = vst [vmem:[#allocation27_spill] sm:$0xff] %v5055_v29  ;;  %3890 = vmatpush3.msra.mxu0 %v4853_v25  ;;  %999 = vmatmul.mubr.f32.vlgmr.msra.gmra.mxu1 %v6891_v35  ;;  %v5074_v62 = vsub.f32 %v4953_v9, %v4992_v13  ;;  %v107_v25 = vld [vmem:[#allocation7 + $0x118] sm:$0xff]  ;;  %v1268_v52 = vand.u32 4294901760, %v5045_v39  ;;  %v122_v39 = vld [vmem:[#allocation7 + $0x190] sm:$0xff] }
  0xac   :  { %6906 = vst [vmem:[#allocation36_spill] sm:$0xff] %v5060_v28  ;;  %3891 = vmatprep.subr.mxu0 %v4873_v32  ;;  %3918 = vmatprep.subr.mxu1 %v6907_v2  ;;  %v6909_v32 = vand.u32 4294901760, %v4995_v37  ;;  %v6910_v2 = vand.u32 4294901760, %v4973_v40  ;;  %v123_v9 = vld [vmem:[#allocation7 + $0x198] sm:$0xff] }
  0xad   :  { %3892 = vmatpush3.msra.mxu0 %v4878_v45  ;;  %3919 = vmatpush3.msra.mxu1 %v6908_v23  ;;  %v1156_v23 = vand.u32 4294901760, %v5053_v19  ;;  %v106_v19 = vld [vmem:[#allocation7 + $0x110] sm:$0xff]  ;;  %v5115_v45 = vand.u32 4294901760, %v139_v21 }
  0xae   :  { %v5082_v1 = vsub.f32 %v4995_v37, %v6909_v32  ;;  %v5090_v35 = vsub.f32 %v4973_v40, %v6910_v2  ;;  %3893 = vmatprep.subr.mxu0 %v4905_v46  ;;  %3920 = vmatprep.subr.mxu1 %v1240_v26  ;;  %v5097_v32 = vsub.f32 %v108_v51, %v5055_v29  ;;  %v6912_v2 = vand.u32 4294901760, %v4910_v42 }
  0xaf   :  { %3894 = vmatpush3.msra.mxu0 %v4895_v0  ;;  %v5108_v46 = vsub.f32 %v5008_v43, %v6913_v6  ;;  %v5110_v26 = vand.u32 4294901760, %v107_v25  ;;  %v5113_v51 = vsub.f32 %v125_v36, %v5060_v28  ;;  %6914 = vst [vmem:[#allocation39_spill] sm:$0xff] %v5115_v45  ;;  %v6916_v42 = vand.u32 4294901760, %v5029_v22  ;;  %v121_v0 = vld [vmem:[#allocation7 + $0x188] sm:$0xff]  ;;  %1341 = vmatprep.mubr.f32.mxu1 %v5115_v45 }
  0xb0   :  { %6911 = vst [vmem:[#allocation28_spill] sm:$0xff] %v5097_v32  ;;  %3921 = vmatpush3.msra.mxu1 %v6912_v2  ;;  %3895 = vmatprep.subr.mxu0 %v4926_v16  ;;  %v5125_v6 = vand.u32 4294901760, %v123_v9  ;;  %v5129_v43 = vand.u32 4294901760, %v5031_v58  ;;  %v6918_v36 = vand.u32 4294901760, %v4963_v57  ;;  %v1275_v4 = vand.u32 4294901760, %v5082_v1 }
  0xb1   :  { %3922 = vmatprep.subr.mxu1 %v6915_v14  ;;  %v5123_v2 = vsub.f32 %v5029_v22, %v6916_v42  ;;  %3896 = vmatpush3.msra.mxu0 %v4928_v63  ;;  %v1163_v14 = vand.u32 4294901760, %v5090_v35  ;;  %v6919_v16 = vand.u32 4294901760, %v5016_v34  ;;  %v6920_v40 = vand.u32 4294901760, %v4980_v44 }
  0xb2   :  { %6917 = vst [vmem:[#allocation40_spill] sm:$0xff] %v5129_v43  ;;  %3923 = vmatpush3.msra.mxu1 %v6918_v36  ;;  %3897 = vmatprep.subr.mxu0 %v4975_v47  ;;  %v5145_v63 = vand.u32 4294901760, %v122_v39  ;;  %v5148_v1 = vand.u32 4294901760, %v106_v19  ;;  %v5151_v35 = vsub.f32 %v124_v33, %v5069_v24  ;;  %v1170_v36 = vand.u32 4294901760, %v5108_v46  ;;  %v120_v46 = vld [vmem:[#allocation7 + $0x180] sm:$0xff] }
  0xb3   :  { %v5139_v42 = vsub.f32 %v5016_v34, %v6919_v16  ;;  %3924 = vmatprep.subr.mxu1 %v6920_v40  ;;  %3898 = vmatpush3.msra.mxu0 %v4965_v54  ;;  %v6922_v16 = vand.u32 4294901760, %v4989_v8  ;;  %v5158_v22 = vsub.f32 %v107_v25, %v5110_v26  ;;  %v105_v40 = vld [vmem:[#allocation7 + $0x108] sm:$0xff]  ;;  %v5162_v57 = vsub.f32 %v139_v21, %v5115_v45  ;;  %v6957_v45 = vld [vmem:[#allocation35_spill] sm:$0xff] }
  0xb4   :  { %6921 = vst [vmem:[#allocation41_spill] sm:$0xff] %v5145_v63  ;;  %3899 = vmatprep.subr.mxu0 %v4992_v13  ;;  %v1282_v33 = vand.u32 4294901760, %v5123_v2  ;;  %v6923_v54 = vand.u32 4294901760, %v5074_v62  ;;  %v5173_v25 = vsub.f32 %v5031_v58, %v5129_v43  ;;  %v104_v13 = vld [vmem:[#allocation7 + $0x100] sm:$0xff]  ;;  %v6925_v58 = vand.u32 4294901760, %v5100_v38 }
  0xb5   :  { %3925 = vmatpush3.msra.mxu1 %v6922_v16  ;;  %v5169_v16 = vand.u32 4294901760, %v121_v0  ;;  %3900 = vmatpush3.msra.mxu0 %v4968_v49  ;;  %v1177_v21 = vand.u32 4294901760, %v5139_v42  ;;  %v5191_v42 = vand.u32 4294901760, %v105_v40  ;;  %v5205_v47 = vand.u32 4294901760, %v104_v13 }
  0xb6   :  { %3926 = vmatprep.subr.mxu1 %v1261_v30  ;;  %v1288_v8 = vsub.f32 %v5074_v62, %v6923_v54  ;;  %v6924_v30 = vand.u32 4294901760, %v5048_v41  ;;  %v5182_v54 = vsub.f32 %v123_v9, %v5125_v6  ;;  %3901 = vmatprep.subr.mxu0 %v5026_v3  ;;  %v1295_v49 = vsub.f32 %v5100_v38, %v6925_v58 }
  0xb7   :  { %3927 = vmatpush3.msra.mxu1 %v1149_v5  ;;  %v5189_v5 = vsub.f32 %v106_v19, %v5148_v1  ;;  %3902 = vmatpush3.msra.mxu0 %v5001_v61  ;;  %v6926_v9 = vand.u32 4294901760, %v5113_v51  ;;  %v5198_v3 = vand.u32 4294901760, %v120_v46  ;;  %v5202_v58 = vsub.f32 %v122_v39, %v5145_v63 }
  0xb8   :  { %v1183_v2 = vsub.f32 %v5048_v41, %v6924_v30  ;;  %3928 = vmatprep.subr.mxu1 %v1268_v52  ;;  %3903 = vmatprep.subr.mxu0 %v5060_v28  ;;  %v1289_v19 = vand.u32 4294901760, %v1288_v8  ;;  %v6625_v30 = vand.u32 4294901760, %v5097_v32  ;;  %v6927_v61 = vand.u32 4294901760, %v5085_v55 }
  0xb9   :  { %3929 = vmatpush3.msra.mxu1 %v1156_v23  ;;  %v1302_v44 = vsub.f32 %v5113_v51, %v6926_v9  ;;  %3904 = vmatpush3.msra.mxu0 %v5037_v50  ;;  %v5215_v28 = vsub.f32 %v121_v0, %v5169_v16  ;;  %v5219_v8 = vsub.f32 %v105_v40, %v5191_v42  ;;  %v6928_v23 = vand.u32 4294901760, %v5151_v35 }
  0xba   :  { %3930 = vmatprep.subr.mxu1 %v1275_v4  ;;  %v1184_v9 = vand.u32 4294901760, %v1183_v2  ;;  %v1190_v52 = vsub.f32 %v5085_v55, %v6927_v61  ;;  %3905 = vmatprep.subr.mxu0 %v5069_v24  ;;  %v1296_v4 = vand.u32 4294901760, %v1295_v49  ;;  %v6628_v2 = vand.u32 4294901760, %v5158_v22 }
  0xbb   :  { %3931 = vmatpush3.msra.mxu1 %v1163_v14  ;;  %v1309_v14 = vsub.f32 %v5151_v35, %v6928_v23  ;;  %3906 = vmatpush3.msra.mxu0 %v5055_v29  ;;  %v1303_v61 = vand.u32 4294901760, %v1302_v44  ;;  %v6929_v0 = vand.u32 4294901760, %v5162_v57  ;;  %v5231_v49 = vsub.f32 %v120_v46, %v5198_v3 }
  0xbc   :  { %3932 = vmatprep.subr.mxu1 %v1282_v33  ;;  %3907 = vmatprep.subr.mxu0 %v5125_v6  ;;  %v5235_v40 = vsub.f32 %v104_v13, %v5205_v47  ;;  %v6932_v44 = vand.u32 4294901760, %v5173_v25  ;;  %v1191_v46 = vand.u32 4294901760, %v1190_v52  ;;  %v6933_v33 = vand.u32 4294901760, %v5182_v54 }
  0xbd   :  { %3933 = vmatpush3.msra.mxu1 %v1170_v36  ;;  %v1103_v39 = vsub.f32 %v5162_v57, %v6929_v0  ;;  %6930 = vst [vmem:[#allocation42_spill] sm:$0xff] %v5231_v49  ;;  %v1197_v36 = vsub.f32 %v5097_v32, %v6625_v30  ;;  %3908 = vmatpush3.msra.mxu0 %v5110_v26  ;;  %v1310_v30 = vand.u32 4294901760, %v1309_v14  ;;  %v6934_v52 = vand.u32 4294901760, %v5202_v58 }
  0xbe   :  { %3934 = vmatprep.subr.mxu1 %v1289_v19  ;;  %6931 = vst [vmem:[#allocation43_spill] sm:$0xff] %v5235_v40  ;;  %v1109_v23 = vsub.f32 %v5173_v25, %v6932_v44  ;;  %v1316_v19 = vsub.f32 %v5182_v54, %v6933_v33  ;;  %3909 = vmatprep.subr.mxu0 %v5145_v63  ;;  %v6630_v13 = vand.u32 4294901760, %v5231_v49  ;;  %v6935_v63 = vand.u32 4294901760, %v5189_v5 }
  0xbf   :  { %3935 = vmatpush3.msra.mxu1 %v1177_v21  ;;  %v1204_v44 = vsub.f32 %v5158_v22, %v6628_v2  ;;  %3910 = vmatpush3.msra.mxu0 %v5148_v1  ;;  %v1104_v21 = vand.u32 4294901760, %v1103_v39  ;;  %v1323_v33 = vsub.f32 %v5202_v58, %v6934_v52  ;;  %v6629_v0 = vand.u32 4294901760, %v5235_v40 }
  0xc0   :  { %3936 = vmatprep.subr.mxu1 %v1296_v4  ;;  %3911 = vmatprep.subr.mxu0 %v5169_v16  ;;  %v1198_v4 = vand.u32 4294901760, %v1197_v36  ;;  %v1110_v14 = vand.u32 4294901760, %v1109_v23  ;;  %v1211_v2 = vsub.f32 %v5189_v5, %v6935_v63  ;;  %v6936_v39 = vand.u32 4294901760, %v5215_v28 }
  0xc1   :  { %3937 = vmatpush3.msra.mxu1 %v1184_v9  ;;  %3912 = vmatpush3.msra.mxu0 %v5191_v42  ;;  %v1317_v9 = vand.u32 4294901760, %v1316_v19  ;;  %v6937_v36 = vand.u32 4294901760, %v5219_v8  ;;  %v1324_v63 = vand.u32 4294901760, %v1323_v33 }
  0xc2   :  { %3938 = vmatprep.subr.mxu1 %v1303_v61  ;;  %v1330_v52 = vsub.f32 %v5215_v28, %v6936_v39  ;;  %3913 = vmatprep.subr.mxu0 %v5198_v3  ;;  %v1205_v61 = vand.u32 4294901760, %v1204_v44  ;;  %v1212_v19 = vand.u32 4294901760, %v1211_v2  ;;  %v6941_v39 = vld [vmem:[#allocation16_spill] sm:$0xff] }
  0xc3   :  { %3939 = vmatpush3.msra.mxu1 %v1191_v46  ;;  %v1218_v23 = vsub.f32 %v5219_v8, %v6937_v36  ;;  %3914 = vmatpush3.msra.mxu0 %v5205_v47  ;;  %v1337_v46 = vsub.f32 %v5231_v49, %v6630_v13  ;;  %v6944_v36 = vld [vmem:[#allocation25_spill] sm:$0xff] }
  0xc4   :  { %3940 = vmatprep.subr.mxu1 %v1310_v30  ;;  %1105 = vmatprep.mubr.f32.mxu0 %v1104_v21  ;;  %v1225_v30 = vsub.f32 %v5235_v40, %v6629_v0  ;;  %v1331_v44 = vand.u32 4294901760, %v1330_v52  ;;  %v6942_v52 = vld [vmem:[#allocation38_spill] sm:$0xff]  ;;  %v6954_v0 = vld [vmem:[#allocation33_spill] sm:$0xff] }
  0xc5   :  { %3941 = vmatpush3.msra.mxu1 %v1198_v4  ;;  %1111 = vmatmul.mubr.f32.vlgmr.msra.gmra.mxu0 %v1110_v14  ;;  %v1219_v21 = vand.u32 4294901760, %v1218_v23  ;;  %v1338_v33 = vand.u32 4294901760, %v1337_v46  ;;  %v6938_v4 = vld [vmem:[#allocation15_spill] sm:$0xff]  ;;  %v6939_v14 = vld [vmem:[#allocation32_spill] sm:$0xff]  ;;  %v6945_v23 = vld [vmem:[#allocation17_spill] sm:$0xff] }
  0xc6   :  { %3942 = vmatprep.subr.mxu1 %v1317_v9  ;;  %3953 = vmatprep.subr.mxu0 %v4838_v7  ;;  %v1226_v2 = vand.u32 4294901760, %v1225_v30  ;;  %v6940_v9 = vld [vmem:[#allocation30_spill] sm:$0xff]  ;;  %v6947_v46 = vld [vmem:[#allocation19_spill] sm:$0xff]  ;;  %v6949_v30 = vld [vmem:[#allocation20_spill] sm:$0xff] }
  0xc7   :  { %3943 = vmatpush3.msra.mxu1 %v1205_v61  ;;  %3954 = vmatpush3.msra.mxu0 %v4825_v17  ;;  %v6943_v61 = vld [vmem:[#allocation34_spill] sm:$0xff]  ;;  %v6955_v13 = vld [vmem:[#allocation29_spill] sm:$0xff] }
  0xc8   :  { %3944 = vmatprep.subr.mxu1 %v1324_v63  ;;  %3955 = vmatprep.subr.mxu0 %v4857_v31  ;;  %v6946_v63 = vld [vmem:[#allocation18_spill] sm:$0xff] }
  0xc9   :  { %3945 = vmatpush3.msra.mxu1 %v1212_v19  ;;  %3956 = vmatpush3.msra.mxu0 %v4833_v60  ;;  %v6948_v19 = vld [vmem:[#allocation21_spill] sm:$0xff] }
  0xca   :  { %3946 = vmatprep.subr.mxu1 %v1331_v44  ;;  %3957 = vmatprep.subr.mxu0 %v4865_v56  ;;  %v6950_v44 = vld [vmem:[#allocation22_spill] sm:$0xff] }
  0xcb   :  { %3947 = vmatpush3.msra.mxu1 %v1219_v21  ;;  %3958 = vmatpush3.msra.mxu0 %v4871_v12  ;;  %v6951_v21 = vld [vmem:[#allocation23_spill] sm:$0xff] }
  0xcc   :  { %3948 = vmatprep.subr.mxu1 %v1338_v33  ;;  %3959 = vmatprep.subr.mxu0 %v4881_v59  ;;  %v6952_v33 = vld [vmem:[#allocation31_spill] sm:$0xff] }
  0xcd   :  { %3949 = vmatpush3.msra.mxu1 %v1226_v2  ;;  %3960 = vmatpush3.msra.mxu0 %v4887_v53  ;;  %v6953_v2 = vld [vmem:[#allocation24_spill] sm:$0xff] }
  0xce   :  { %1343 = vmatmul.mubr.f32.vlgmr.msra.gmra.mxu1 %v5129_v43  ;;  %3961 = vmatprep.subr.mxu0 %v4918_v10  ;;  %v6956_v43 = vld [vmem:[#allocation26_spill] sm:$0xff] }
  0xcf   :  { %3988 = vmatprep.subr.mxu1 %v4811_v11  ;;  %3962 = vmatpush3.msra.mxu0 %v4924_v15 }
  0xd0   :  { %3989 = vmatpush3.msra.mxu1 %v4806_v48  ;;  %3963 = vmatprep.subr.mxu0 %v4956_v27 }
  0xd1   :  { %3990 = vmatprep.subr.mxu1 %v4827_v20  ;;  %3964 = vmatpush3.msra.mxu0 %v4941_v18 }
  0xd2   :  { %3991 = vmatpush3.msra.mxu1 %v6938_v4  ;;  %3965 = vmatprep.subr.mxu0 %v4995_v37 }
  0xd3   :  { %3992 = vmatprep.subr.mxu1 %v6939_v14  ;;  %3966 = vmatpush3.msra.mxu0 %v6940_v9 }
  0xd4   :  { %3993 = vmatpush3.msra.mxu1 %v6941_v39  ;;  %3967 = vmatprep.subr.mxu0 %v6942_v52 }
  0xd5   :  { %3994 = vmatprep.subr.mxu1 %v6943_v61  ;;  %3968 = vmatpush3.msra.mxu0 %v6944_v36 }
  0xd6   :  { %3995 = vmatpush3.msra.mxu1 %v6945_v23  ;;  %3969 = vmatprep.subr.mxu0 %v5074_v62 }
  0xd7   :  { %3996 = vmatprep.subr.mxu1 %v6946_v63  ;;  %3970 = vmatpush3.msra.mxu0 %v5016_v34 }
  0xd8   :  { %3997 = vmatpush3.msra.mxu1 %v6947_v46  ;;  %3971 = vmatprep.subr.mxu0 %v5100_v38 }
  0xd9   :  { %3998 = vmatprep.subr.mxu1 %v6948_v19  ;;  %3972 = vmatpush3.msra.mxu0 %v5048_v41 }
  0xda   :  { %3999 = vmatpush3.msra.mxu1 %v6949_v30  ;;  %3973 = vmatprep.subr.mxu0 %v5113_v51 }
  0xdb   :  { %4000 = vmatprep.subr.mxu1 %v6950_v44  ;;  %3974 = vmatpush3.msra.mxu0 %v5085_v55 }
  0xdc   :  { %4001 = vmatpush3.msra.mxu1 %v6951_v21  ;;  %3975 = vmatprep.subr.mxu0 %v5151_v35 }
  0xdd   :  { %4002 = vmatprep.subr.mxu1 %v6952_v33  ;;  %3976 = vmatpush3.msra.mxu0 %v5097_v32  ;;  %v6958_v32 = vld [vmem:[#allocation36_spill] sm:$0xff] }
  0xde   :  { %4003 = vmatpush3.msra.mxu1 %v6953_v2  ;;  %3977 = vmatprep.subr.mxu0 %v5182_v54 }
  0xdf   :  { %4004 = vmatprep.subr.mxu1 %v6954_v0  ;;  %3978 = vmatpush3.msra.mxu0 %v5158_v22 }
  0xe0   :  { %4005 = vmatpush3.msra.mxu1 %v6955_v13  ;;  %3979 = vmatprep.subr.mxu0 %v5202_v58 }
  0xe1   :  { %4006 = vmatprep.subr.mxu1 %v6956_v43  ;;  %3980 = vmatpush3.msra.mxu0 %v5189_v5 }
  0xe2   :  { %4007 = vmatpush3.msra.mxu1 %v6957_v45  ;;  %3981 = vmatprep.subr.mxu0 %v5215_v28 }
  0xe3   :  { %4008 = vmatprep.subr.mxu1 %v6958_v32  ;;  %3982 = vmatpush3.msra.mxu0 %v5219_v8  ;;  %v6959_v32 = vand.u32 4294901760, %v4838_v7  ;;  %v6964_v7 = vand.u32 4294901760, %v4865_v56  ;;  %v6969_v56 = vand.u32 4294901760, %v5173_v25 }
  0xe4   :  { %4009 = vmatpush3.msra.mxu1 %v5037_v50  ;;  %3983 = vmatprep.subr.mxu0 %v5231_v49  ;;  %v6960_v50 = vand.u32 4294901760, %v4825_v17  ;;  %v6961_v49 = vld [vmem:[#allocation41_spill] sm:$0xff]  ;;  %v6965_v17 = vand.u32 4294901760, %v4871_v12  ;;  %v6971_v12 = vand.u32 4294901760, %v4924_v15  ;;  %v6978_v15 = vand.u32 4294901760, %v5074_v62 }
  0xe5   :  { %4010 = vmatprep.subr.mxu1 %v5069_v24  ;;  %3984 = vmatpush3.msra.mxu0 %v5235_v40  ;;  %v6962_v40 = vand.u32 4294901760, %v4857_v31  ;;  %v6966_v31 = vand.u32 4294901760, %v4881_v59  ;;  %v6972_v59 = vand.u32 4294901760, %v4956_v27  ;;  %v6981_v27 = vand.u32 4294901760, %v5048_v41 }
  0xe6   :  { %1478 = vmatprep.mubr.f32.mxu0 %v5162_v57  ;;  %4011 = vmatpush3.msra.mxu1 %v5055_v29  ;;  %v6963_v29 = vand.u32 4294901760, %v4833_v60  ;;  %v6967_v60 = vand.u32 4294901760, %v5162_v57  ;;  %v6982_v62 = vand.u32 4294901760, %v5113_v51  ;;  %v6987_v51 = vand.u32 4294901760, %v5182_v54  ;;  %v6992_v54 = vld [vmem:[#allocation36_spill] sm:$0xff] }
  0xe7   :  { %1481 = vmatmul.mubr.f32.vlgmr.msra.gmra.mxu0 %v5173_v25  ;;  %4012 = vmatprep.subr.mxu1 %v5125_v6  ;;  %v6989_v57 = vand.u32 4294901760, %v5202_v58  ;;  %v6991_v25 = vand.u32 4294901760, %v5215_v28  ;;  %v7001_v28 = vld [vmem:[#allocation40_spill] sm:$0xff] }
  0xe8   :  { %4023 = vmatprep.subr.mxu0 %v6959_v32  ;;  %4013 = vmatpush3.msra.mxu1 %v5110_v26  ;;  %v6984_v32 = vand.u32 4294901760, %v5151_v35  ;;  %v6990_v35 = vand.u32 4294901760, %v5189_v5 }
  0xe9   :  { %4024 = vmatpush3.msra.mxu0 %v6960_v50  ;;  %4014 = vmatprep.subr.mxu1 %v6961_v49  ;;  %v6970_v50 = vand.u32 4294901760, %v4918_v10  ;;  %v6974_v10 = vand.u32 4294901760, %v4995_v37  ;;  %v6979_v37 = vand.u32 4294901760, %v5016_v34  ;;  %v6983_v34 = vand.u32 4294901760, %v5085_v55 }
  0xea   :  { %4025 = vmatprep.subr.mxu0 %v6962_v40  ;;  %4015 = vmatpush3.msra.mxu1 %v5148_v1  ;;  %v6988_v55 = vand.u32 4294901760, %v5158_v22  ;;  %v6993_v22 = vand.u32 4294901760, %v5219_v8  ;;  %v6994_v40 = vld [vmem:[#allocation37_spill] sm:$0xff] }
  0xeb   :  { %4026 = vmatpush3.msra.mxu0 %v6963_v29  ;;  %4016 = vmatprep.subr.mxu1 %v5169_v16  ;;  %v6968_v29 = vand.u32 4294901760, %v4887_v53  ;;  %v6973_v53 = vand.u32 4294901760, %v4941_v18  ;;  %v6980_v18 = vand.u32 4294901760, %v5100_v38  ;;  %v6985_v38 = vld [vmem:[#allocation28_spill] sm:$0xff]  ;;  %v1930_v8 = vld [vmem:[#allocation8 + $0x1e0] sm:$0xff] }
  0xec   :  { %4027 = vmatprep.subr.mxu0 %v6964_v7  ;;  %4017 = vmatpush3.msra.mxu1 %v5191_v42  ;;  %v6986_v41 = vand.u32 4294901760, %v6985_v38 }
  0xed   :  { %4028 = vmatpush3.msra.mxu0 %v6965_v17  ;;  %4018 = vmatprep.subr.mxu1 %v5198_v3 }
  0xee   :  { %4029 = vmatprep.subr.mxu0 %v6966_v31  ;;  %4019 = vmatpush3.msra.mxu1 %v5205_v47 }
  0xef   :  { %1585 = vmatprep.mubr.f32.mxu1 %v6967_v60  ;;  %4030 = vmatpush3.msra.mxu0 %v6968_v29 }
  0xf0   :  { %1589 = vmatmul.mubr.f32.vlgmr.msra.gmra.mxu1 %v6969_v56  ;;  %4031 = vmatprep.subr.mxu0 %v6970_v50  ;;  %v1915_v50 = vld [vmem:[#allocation8 + $0x168] sm:$0xff] }
  0xf1   :  { %4058 = vmatprep.subr.mxu1 %v4811_v11  ;;  %4032 = vmatpush3.msra.mxu0 %v6971_v12  ;;  %v6975_v11 = vand.u32 4294901760, %v6940_v9 }
  0xf2   :  { %4059 = vmatpush3.msra.mxu1 %v4806_v48  ;;  %4033 = vmatprep.subr.mxu0 %v6972_v59  ;;  %v6976_v48 = vand.u32 4294901760, %v6942_v52  ;;  %v1922_v52 = vld [vmem:[#allocation8 + $0x1a0] sm:$0xff] }
  0xf3   :  { %4060 = vmatprep.subr.mxu1 %v4827_v20  ;;  %4034 = vmatpush3.msra.mxu0 %v6973_v53  ;;  %v6977_v20 = vand.u32 4294901760, %v6944_v36 }
  0xf4   :  { %4061 = vmatpush3.msra.mxu1 %v6938_v4  ;;  %4035 = vmatprep.subr.mxu0 %v6974_v10  ;;  %v5453_v4 = vand.u32 4294901760, %v1930_v8  ;;  %v1914_v10 = vld [vmem:[#allocation8 + $0x160] sm:$0xff] }
  0xf5   :  { %4062 = vmatprep.subr.mxu1 %v6939_v14  ;;  %4036 = vmatpush3.msra.mxu0 %v6975_v11 }
  0xf6   :  { %4063 = vmatpush3.msra.mxu1 %v6941_v39  ;;  %4037 = vmatprep.subr.mxu0 %v6976_v48 }
  0xf7   :  { %4064 = vmatprep.subr.mxu1 %v6943_v61  ;;  %4038 = vmatpush3.msra.mxu0 %v6977_v20 }
  0xf8   :  { %4065 = vmatpush3.msra.mxu1 %v6945_v23  ;;  %4039 = vmatprep.subr.mxu0 %v6978_v15  ;;  %v5478_v23 = vand.u32 4294901760, %v1922_v52 }
  0xf9   :  { %4066 = vmatprep.subr.mxu1 %v6946_v63  ;;  %4040 = vmatpush3.msra.mxu0 %v6979_v37  ;;  %v1919_v63 = vld [vmem:[#allocation8 + $0x188] sm:$0xff] }
  0xfa   :  { %4067 = vmatpush3.msra.mxu1 %v6947_v46  ;;  %4041 = vmatprep.subr.mxu0 %v6980_v18  ;;  %v5496_v7 = vsub.f32 %v1922_v52, %v5478_v23  ;;  %v1911_v37 = vld [vmem:[#allocation8 + $0x148] sm:$0xff]  ;;  %v1910_v18 = vld [vmem:[#allocation8 + $0x140] sm:$0xff] }
  0xfb   :  { %4068 = vmatprep.subr.mxu1 %v6948_v19  ;;  %4042 = vmatpush3.msra.mxu0 %v6981_v27 }
  0xfc   :  { %4069 = vmatpush3.msra.mxu1 %v6949_v30  ;;  %4043 = vmatprep.subr.mxu0 %v6982_v62  ;;  %v6651_v53 = vand.u32 4294901760, %v5496_v7 }
  0xfd   :  { %4070 = vmatprep.subr.mxu1 %v6950_v44  ;;  %4044 = vmatpush3.msra.mxu0 %v6983_v34  ;;  %v5488_v44 = vand.u32 4294901760, %v1919_v63  ;;  %v5524_v34 = vand.u32 4294901760, %v1915_v50 }
  0xfe   :  { %4071 = vmatpush3.msra.mxu1 %v6951_v21  ;;  %4045 = vmatprep.subr.mxu0 %v6984_v32  ;;  %v1918_v21 = vld [vmem:[#allocation8 + $0x180] sm:$0xff]  ;;  %v2075_v62 = vsub.f32 %v5496_v7, %v6651_v53  ;;  %v1907_v32 = vld [vmem:[#allocation8 + $0x128] sm:$0xff] }
  0xff   :  { %4072 = vmatprep.subr.mxu1 %v6952_v33  ;;  %4046 = vmatpush3.msra.mxu0 %v6986_v41  ;;  %v5498_v17 = vand.u32 4294901760, %v1918_v21  ;;  %v5506_v56 = vsub.f32 %v1919_v63, %v5488_v44 }
 0x100   :  { %4073 = vmatpush3.msra.mxu1 %v6953_v2  ;;  %4047 = vmatprep.subr.mxu0 %v6987_v51 }
 0x101   :  { %4074 = vmatprep.subr.mxu1 %v6954_v0  ;;  %4048 = vmatpush3.msra.mxu0 %v6988_v55  ;;  %v6995_v0 = vld [vmem:[#allocation42_spill] sm:$0xff]  ;;  %v6650_v20 = vand.u32 4294901760, %v5506_v56  ;;  %v5519_v15 = vsub.f32 %v1918_v21, %v5498_v17  ;;  %v5530_v55 = vand.u32 4294901760, %v1914_v10 }
 0x102   :  { %4075 = vmatpush3.msra.mxu1 %v6955_v13  ;;  %4049 = vmatprep.subr.mxu0 %v6989_v57  ;;  %v6996_v58 = vand.u32 4294901760, %v6995_v0  ;;  %v6999_v13 = vld [vmem:[#allocation39_spill] sm:$0xff]  ;;  %v1906_v57 = vld [vmem:[#allocation8 + $0x120] sm:$0xff] }
 0x103   :  { %4076 = vmatprep.subr.mxu1 %v6956_v43  ;;  %4050 = vmatpush3.msra.mxu0 %v6990_v35  ;;  %v6997_v43 = vld [vmem:[#allocation43_spill] sm:$0xff]  ;;  %v2081_v41 = vsub.f32 %v5506_v56, %v6650_v20  ;;  %v6648_v51 = vand.u32 4294901760, %v5519_v15  ;;  %v2076_v35 = vand.u32 4294901760, %v2075_v62  ;;  %v1883_v20 = vld [vmem:[#allocation8 + $0x68] sm:$0xff] }
 0x104   :  { %4077 = vmatpush3.msra.mxu1 %v6957_v45  ;;  %4051 = vmatprep.subr.mxu0 %v6991_v25  ;;  %v6998_v5 = vand.u32 4294901760, %v6997_v43  ;;  %v7000_v45 = vld [vmem:[#allocation27_spill] sm:$0xff]  ;;  %v5533_v25 = vsub.f32 %v1915_v50, %v5524_v34  ;;  %v5544_v43 = vsub.f32 %v1914_v10, %v5530_v55 }
 0x105   :  { %4078 = vmatprep.subr.mxu1 %v6992_v54  ;;  %4052 = vmatpush3.msra.mxu0 %v6993_v22  ;;  %v5535_v54 = vand.u32 4294901760, %v1911_v37  ;;  %v5537_v22 = vand.u32 4294901760, %v1910_v18  ;;  %v2082_v0 = vand.u32 4294901760, %v2081_v41  ;;  %v1895_v41 = vld [vmem:[#allocation8 + $0xc8] sm:$0xff] }
 0x106   :  { %4079 = vmatpush3.msra.mxu1 %v6994_v40  ;;  %4053 = vmatprep.subr.mxu0 %v6996_v58  ;;  %v1903_v40 = vld [vmem:[#allocation8 + $0x108] sm:$0xff]  ;;  %v2087_v58 = vsub.f32 %v5519_v15, %v6648_v51 }
 0x107   :  { %4080 = vmatprep.subr.mxu1 %v5069_v24  ;;  %4054 = vmatpush3.msra.mxu0 %v6998_v5  ;;  %v1931_v24 = vld [vmem:[#allocation8 + $0x1e8] sm:$0xff]  ;;  %v5546_v5 = vand.u32 4294901760, %v1907_v32  ;;  %v5563_v52 = vand.u32 4294901760, %v1903_v40 }
 0x108   :  { %1755 = vmatprep.mubr.f32.mxu0 %v6999_v13  ;;  %4081 = vmatpush3.msra.mxu1 %v7000_v45  ;;  %v5551_v45 = vsub.f32 %v1911_v37, %v5535_v54 }
 0x109   :  { %1757 = vmatmul.mubr.f32.vlgmr.msra.gmra.mxu0 %v7001_v28  ;;  %4082 = vmatprep.subr.mxu1 %v5125_v6  ;;  %v5451_v6 = vand.u32 4294901760, %v1931_v24  ;;  %v5580_v50 = vsub.f32 %v1903_v40, %v5563_v52 }
 0x10a   :  { %1859 = vmatprep.mubr.f32.mxu1 %v6999_v13  ;;  %4083 = vmatpush3.msra.mxu1 %v5110_v26  ;;  %v1927_v26 = vld [vmem:[#allocation8 + $0x1c8] sm:$0xff]  ;;  %v6647_v13 = vand.u32 4294901760, %v5533_v25 }
 0x10b   :  { %4084 = vmatprep.subr.mxu1 %v6961_v49  ;;  %7002 = vst [vmem:[#allocation15_spill] sm:$0xff] %v5451_v6  ;;  %v5456_v49 = vsub.f32 %v1931_v24, %v5451_v6  ;;  %1935 = vmatprep.subr.mxu0 %v5451_v6  ;;  %v5556_v24 = vand.u32 4294901760, %v1906_v57  ;;  %7005 = vst [vmem:[#allocation16_spill] sm:$0xff] %v5580_v50 }
 0x10c   :  { %4085 = vmatpush3.msra.mxu1 %v5148_v1  ;;  %v5458_v1 = vand.u32 4294901760, %v1927_v26  ;;  %1937 = vmatpush1.msra.mxu0 %v5453_v4  ;;  %v2093_v63 = vsub.f32 %v5533_v25, %v6647_v13 }
 0x10d   :  { %4086 = vmatprep.subr.mxu1 %v5169_v16  ;;  %7003 = vst [vmem:[#allocation32_spill] sm:$0xff] %v5456_v49  ;;  %v1926_v16 = vld [vmem:[#allocation8 + $0x1c0] sm:$0xff]  ;;  %v6659_v14 = vand.u32 4294901760, %v5456_v49 }
 0x10e   :  { %4087 = vmatpush3.msra.mxu1 %v5191_v42  ;;  %v1923_v42 = vld [vmem:[#allocation8 + $0x1a8] sm:$0xff]  ;;  %v5469_v9 = vsub.f32 %v1927_v26, %v5458_v1  ;;  %1939 = vmatprep.subr.mxu0 %v5458_v1  ;;  %v2088_v26 = vand.u32 4294901760, %v2087_v58  ;;  %v2094_v10 = vand.u32 4294901760, %v2093_v63 }
 0x10f   :  { %4088 = vmatprep.subr.mxu1 %v5198_v3  ;;  %v5462_v3 = vsub.f32 %v1930_v8, %v5453_v4  ;;  %v5471_v39 = vand.u32 4294901760, %v1923_v42  ;;  %v2045_v46 = vsub.f32 %v5456_v49, %v6659_v14  ;;  %v1902_v8 = vld [vmem:[#allocation8 + $0x100] sm:$0xff] }
 0x110   :  { %4089 = vmatpush3.msra.mxu1 %v5205_v47  ;;  %v5464_v47 = vand.u32 4294901760, %v1926_v16  ;;  %v6655_v19 = vand.u32 4294901760, %v5469_v9 }
 0x111   :  { %1861 = vmatmul.mubr.f32.vlgmr.msra.gmra.mxu1 %v7001_v28  ;;  %v6657_v61 = vand.u32 4294901760, %v5462_v3  ;;  %v5486_v30 = vsub.f32 %v1923_v42, %v5471_v39  ;;  %v2046_v31 = vand.u32 4294901760, %v2045_v46  ;;  %v5554_v28 = vsub.f32 %v1910_v18, %v5537_v22  ;;  %v1898_v18 = vld [vmem:[#allocation8 + $0xe0] sm:$0xff] }
 0x112   :  { %v5476_v36 = vsub.f32 %v1926_v16, %v5464_v47  ;;  %1941 = vmatpush1.msra.mxu0 %v5464_v47  ;;  %v2057_v60 = vsub.f32 %v5469_v9, %v6655_v19  ;;  %v6645_v16 = vand.u32 4294901760, %v5544_v43  ;;  %v5561_v42 = vsub.f32 %v1907_v32, %v5546_v5 }
 0x113   :  { %1943 = vmatprep.subr.mxu0 %v5471_v39  ;;  %v2051_v33 = vsub.f32 %v5462_v3, %v6657_v61  ;;  %v6653_v29 = vand.u32 4294901760, %v5486_v30  ;;  %2047 = vmatprep.subr.mxu1 %v2046_v31  ;;  %v6644_v46 = vand.u32 4294901760, %v5551_v45  ;;  %v6642_v21 = vand.u32 4294901760, %v5554_v28  ;;  %v1878_v61 = vld [vmem:[#allocation8 + $0x40] sm:$0xff] }
 0x114   :  { %v6654_v2 = vand.u32 4294901760, %v5476_v36  ;;  %1945 = vmatpush1.msra.mxu0 %v5478_v23  ;;  %v2058_v11 = vand.u32 4294901760, %v2057_v60  ;;  %v2099_v31 = vsub.f32 %v5544_v43, %v6645_v16  ;;  %v6640_v60 = vand.u32 4294901760, %v5561_v42  ;;  %v1886_v16 = vld [vmem:[#allocation8 + $0x80] sm:$0xff] }
 0x115   :  { %1947 = vmatprep.subr.mxu0 %v5488_v44  ;;  %v2052_v12 = vand.u32 4294901760, %v2051_v33  ;;  %v2069_v48 = vsub.f32 %v5486_v30, %v6653_v29  ;;  %v5572_v33 = vsub.f32 %v1906_v57, %v5556_v24  ;;  %v6643_v32 = vand.u32 4294901760, %v5580_v50  ;;  %v1894_v57 = vld [vmem:[#allocation8 + $0xc0] sm:$0xff] }
 0x116   :  { %v2063_v59 = vsub.f32 %v5476_v36, %v6654_v2  ;;  %1949 = vmatpush1.msra.mxu0 %v5498_v17  ;;  %v2117_v62 = vsub.f32 %v5561_v42, %v6640_v60  ;;  %v5610_v60 = vand.u32 4294901760, %v1898_v18  ;;  %v1882_v29 = vld [vmem:[#allocation8 + $0x60] sm:$0xff] }
 0x117   :  { %2053 = vmatpush1.msra.mxu1 %v2052_v12  ;;  %v2070_v38 = vand.u32 4294901760, %v2069_v48  ;;  %1951 = vmatprep.subr.mxu0 %v5524_v34  ;;  %7004 = vst [vmem:[#allocation30_spill] sm:$0xff] %v5572_v33  ;;  %v5582_v12 = vand.u32 4294901760, %v1902_v8  ;;  %v2111_v48 = vsub.f32 %v5554_v28, %v6642_v21  ;;  %v6641_v37 = vand.u32 4294901760, %v5572_v33 }
 0x118   :  { %v2064_v27 = vand.u32 4294901760, %v2063_v59  ;;  %2059 = vmatprep.subr.mxu1 %v2058_v11  ;;  %1953 = vmatpush1.msra.mxu0 %v5530_v55  ;;  %v1899_v59 = vld [vmem:[#allocation8 + $0xe8] sm:$0xff]  ;;  %v2105_v11 = vsub.f32 %v5551_v45, %v6644_v46  ;;  %v2118_v63 = vand.u32 4294901760, %v2117_v62  ;;  %v5617_v21 = vand.u32 4294901760, %v1894_v57 }
 0x119   :  { %1955 = vmatprep.subr.mxu0 %v5535_v54  ;;  %v2112_v40 = vand.u32 4294901760, %v2111_v48  ;;  %v5604_v58 = vand.u32 4294901760, %v1899_v59  ;;  %v5624_v46 = vsub.f32 %v1898_v18, %v5610_v60 }
 0x11a   :  { %2065 = vmatpush1.msra.mxu1 %v2064_v27  ;;  %1957 = vmatpush1.msra.mxu0 %v5537_v22  ;;  %v2100_v27 = vand.u32 4294901760, %v2099_v31 }
 0x11b   :  { %2071 = vmatprep.subr.mxu1 %v2070_v38  ;;  %1959 = vmatprep.subr.mxu0 %v5546_v5  ;;  %v5598_v38 = vsub.f32 %v1902_v8, %v5582_v12  ;;  %v2129_v8 = vsub.f32 %v5580_v50, %v6643_v32  ;;  %v5613_v48 = vsub.f32 %v1899_v59, %v5604_v58 }
 0x11c   :  { %2077 = vmatpush1.msra.mxu1 %v2076_v35  ;;  %1961 = vmatpush1.msra.mxu0 %v5556_v24  ;;  %v2106_v35 = vand.u32 4294901760, %v2105_v11  ;;  %7008 = vst [vmem:[#allocation25_spill] sm:$0xff] %v5624_v46 }
 0x11d   :  { %2083 = vmatprep.subr.mxu1 %v2082_v0  ;;  %1963 = vmatprep.subr.mxu0 %v5563_v52  ;;  %7006 = vst [vmem:[#allocation38_spill] sm:$0xff] %v5598_v38  ;;  %v2123_v0 = vsub.f32 %v5572_v33, %v6641_v37  ;;  %v6646_v31 = vand.u32 4294901760, %v5598_v38  ;;  %7007 = vst [vmem:[#allocation34_spill] sm:$0xff] %v5613_v48  ;;  %v5615_v37 = vand.u32 4294901760, %v1895_v41  ;;  %v2130_v62 = vand.u32 4294901760, %v2129_v8 }
 0x11e   :  { %2089 = vmatpush1.msra.mxu1 %v2088_v26  ;;  %1965 = vmatpush1.msra.mxu0 %v5582_v12  ;;  %v1891_v26 = vld [vmem:[#allocation8 + $0xa8] sm:$0xff]  ;;  %v6649_v59 = vand.u32 4294901760, %v5613_v48 }
 0x11f   :  { %2095 = vmatprep.subr.mxu1 %v2094_v10  ;;  %v1890_v10 = vld [vmem:[#allocation8 + $0xa0] sm:$0xff]  ;;  %v2124_v11 = vand.u32 4294901760, %v2123_v0  ;;  %1967 = vmatprep.subr.mxu0 %v5604_v58  ;;  %v2135_v32 = vsub.f32 %v5598_v38, %v6646_v31  ;;  %v5631_v0 = vsub.f32 %v1895_v41, %v5615_v37  ;;  %v6652_v31 = vand.u32 4294901760, %v5624_v46 }
 0x120   :  { %2101 = vmatpush1.msra.mxu1 %v2100_v27  ;;  %v1887_v27 = vld [vmem:[#allocation8 + $0x88] sm:$0xff]  ;;  %1969 = vmatpush1.msra.mxu0 %v5610_v60  ;;  %v5636_v8 = vand.u32 4294901760, %v1890_v10  ;;  %v2141_v41 = vsub.f32 %v5613_v48, %v6649_v59  ;;  %v5662_v59 = vand.u32 4294901760, %v1886_v16 }
 0x121   :  { %2107 = vmatprep.subr.mxu1 %v2106_v35  ;;  %v5626_v35 = vand.u32 4294901760, %v1891_v26  ;;  %7009 = vst [vmem:[#allocation17_spill] sm:$0xff] %v5631_v0  ;;  %1971 = vmatprep.subr.mxu0 %v5615_v37  ;;  %v2136_v18 = vand.u32 4294901760, %v2135_v32 }
 0x122   :  { %2113 = vmatpush1.msra.mxu1 %v2112_v40  ;;  %v5634_v40 = vsub.f32 %v1894_v57, %v5617_v21  ;;  %7011 = vst [vmem:[#allocation19_spill] sm:$0xff] %v5636_v8  ;;  %1973 = vmatpush1.msra.mxu0 %v5617_v21  ;;  %v6656_v57 = vand.u32 4294901760, %v5631_v0  ;;  %v5652_v32 = vsub.f32 %v1890_v10, %v5636_v8  ;;  %7016 = vst [vmem:[#allocation31_spill] sm:$0xff] %v5662_v59 }
 0x123   :  { %2119 = vmatprep.subr.mxu1 %v2118_v63  ;;  %v5641_v13 = vsub.f32 %v1891_v26, %v5626_v35  ;;  %v5643_v63 = vand.u32 4294901760, %v1887_v27  ;;  %1975 = vmatprep.subr.mxu0 %v5626_v35  ;;  %v2147_v26 = vsub.f32 %v5624_v46, %v6652_v31  ;;  %v2142_v53 = vand.u32 4294901760, %v2141_v41  ;;  %v1875_v46 = vld [vmem:[#allocation8 + $0x28] sm:$0xff] }
 0x124   :  { %7010 = vst [vmem:[#allocation18_spill] sm:$0xff] %v5634_v40  ;;  %2125 = vmatpush1.msra.mxu1 %v2124_v11  ;;  %v6658_v51 = vand.u32 4294901760, %v5634_v40  ;;  %7014 = vst [vmem:[#allocation22_spill] sm:$0xff] %v5652_v32  ;;  %1977 = vmatpush1.msra.mxu0 %v5636_v8  ;;  %v2153_v10 = vsub.f32 %v5631_v0, %v6656_v57  ;;  %v6669_v31 = vand.u32 4294901760, %v5652_v32  ;;  %v1879_v57 = vld [vmem:[#allocation8 + $0x48] sm:$0xff]  ;;  %v5690_v0 = vand.u32 4294901760, %v1882_v29 }
 0x125   :  { %7012 = vst [vmem:[#allocation21_spill] sm:$0xff] %v5641_v13  ;;  %7013 = vst [vmem:[#allocation20_spill] sm:$0xff] %v5643_v63  ;;  %2131 = vmatprep.subr.mxu1 %v2130_v62  ;;  %v6662_v11 = vand.u32 4294901760, %v5641_v13  ;;  %v5660_v62 = vsub.f32 %v1887_v27, %v5643_v63  ;;  %1979 = vmatprep.subr.mxu0 %v5643_v63  ;;  %v2148_v27 = vand.u32 4294901760, %v2147_v26 }
 0x126   :  { %2137 = vmatpush1.msra.mxu1 %v2136_v18  ;;  %v2159_v18 = vsub.f32 %v5634_v40, %v6658_v51  ;;  %v5678_v19 = vsub.f32 %v1886_v16, %v5662_v59  ;;  %1981 = vmatpush1.msra.mxu0 %v5662_v59  ;;  %v2154_v51 = vand.u32 4294901760, %v2153_v10  ;;  %v2171_v26 = vsub.f32 %v5652_v32, %v6669_v31  ;;  %v1870_v32 = vld [vmem:[#allocation8] sm:$0xff] }
 0x127   :  { %7015 = vst [vmem:[#allocation23_spill] sm:$0xff] %v5660_v62  ;;  %v2165_v2 = vsub.f32 %v5641_v13, %v6662_v11  ;;  %v6670_v41 = vand.u32 4294901760, %v5660_v62  ;;  %2143 = vmatprep.subr.mxu1 %v2142_v53  ;;  %v5684_v40 = vand.u32 4294901760, %v1883_v20  ;;  %7019 = vst [vmem:[#allocation29_spill] sm:$0xff] %v5690_v0  ;;  %v5697_v31 = vand.u32 4294901760, %v1878_v61 }
 0x128   :  { %7017 = vst [vmem:[#allocation24_spill] sm:$0xff] %v5678_v19  ;;  %v2160_v14 = vand.u32 4294901760, %v2159_v18  ;;  %2149 = vmatpush1.msra.mxu1 %v2148_v27  ;;  %v6675_v13 = vand.u32 4294901760, %v5678_v19  ;;  %v2172_v53 = vand.u32 4294901760, %v2171_v26  ;;  %v5695_v18 = vand.u32 4294901760, %v1879_v57  ;;  %v1874_v27 = vld [vmem:[#allocation8 + $0x20] sm:$0xff] }
 0x129   :  { %7018 = vst [vmem:[#allocation33_spill] sm:$0xff] %v5684_v40  ;;  %v2166_v11 = vand.u32 4294901760, %v2165_v2  ;;  %v2177_v16 = vsub.f32 %v5660_v62, %v6670_v41  ;;  %2155 = vmatprep.subr.mxu1 %v2154_v51  ;;  %v5693_v10 = vsub.f32 %v1883_v20, %v5684_v40  ;;  %7022 = vst [vmem:[#allocation41_spill] sm:$0xff] %v5697_v31  ;;  %1983 = vmatprep.subr.mxu0 %v5684_v40 }
 0x12a   :  { %7021 = vst [vmem:[#allocation35_spill] sm:$0xff] %v5695_v18  ;;  %2161 = vmatpush1.msra.mxu1 %v2160_v14  ;;  %v2183_v41 = vsub.f32 %v5678_v19, %v6675_v13  ;;  %v5704_v62 = vsub.f32 %v1882_v29, %v5690_v0  ;;  %1985 = vmatpush1.msra.mxu0 %v5690_v0  ;;  %v5714_v14 = vand.u32 4294901760, %v1875_v46  ;;  %v5718_v19 = vand.u32 4294901760, %v1874_v27 }
 0x12b   :  { %7020 = vst [vmem:[#allocation26_spill] sm:$0xff] %v5693_v10  ;;  %v2178_v2 = vand.u32 4294901760, %v2177_v16  ;;  %2167 = vmatprep.subr.mxu1 %v2166_v11  ;;  %v6680_v20 = vand.u32 4294901760, %v5693_v10  ;;  %v5709_v51 = vsub.f32 %v1879_v57, %v5695_v18  ;;  %v5712_v26 = vsub.f32 %v1878_v61, %v5697_v31  ;;  %v1871_v16 = vld [vmem:[#allocation8 + $0x8] sm:$0xff]  ;;  %1987 = vmatprep.subr.mxu0 %v5695_v18 }
 0x12c   :  { %7023 = vst [vmem:[#allocation28_spill] sm:$0xff] %v5704_v62  ;;  %7026 = vst [vmem:[#allocation42_spill] sm:$0xff] %v5714_v14  ;;  %2173 = vmatpush1.msra.mxu1 %v2172_v53  ;;  %v2184_v29 = vand.u32 4294901760, %v2183_v41  ;;  %v6683_v13 = vand.u32 4294901760, %v5704_v62  ;;  %1989 = vmatpush1.msra.mxu0 %v5697_v31  ;;  %v5727_v0 = vsub.f32 %v1875_v46, %v5714_v14 }
 0x12d   :  { %7024 = vst [vmem:[#allocation36_spill] sm:$0xff] %v5709_v51  ;;  %7025 = vst [vmem:[#allocation37_spill] sm:$0xff] %v5712_v26  ;;  %2179 = vmatprep.subr.mxu1 %v2178_v2  ;;  %v2189_v61 = vsub.f32 %v5693_v10, %v6680_v20  ;;  %v6690_v57 = vand.u32 4294901760, %v5709_v51  ;;  %1991 = vmatprep.subr.mxu0 %v5714_v14  ;;  %v5734_v53 = vsub.f32 %v1874_v27, %v5718_v19 }
 0x12e   :  { %7027 = vst [vmem:[#allocation43_spill] sm:$0xff] %v5718_v19  ;;  %7028 = vst [vmem:[#allocation39_spill] sm:$0xff] %v5727_v0  ;;  %2185 = vmatpush1.msra.mxu1 %v2184_v29  ;;  %v2195_v41 = vsub.f32 %v5704_v62, %v6683_v13  ;;  %v5736_v2 = vand.u32 4294901760, %v1871_v16  ;;  %v5738_v20 = vand.u32 4294901760, %v1870_v32  ;;  %1993 = vmatpush1.msra.mxu0 %v5718_v19  ;;  %v7032_v29 = vand.u32 4294901760, %v5712_v26 }
 0x12f   :  { %7029 = vst [vmem:[#allocation27_spill] sm:$0xff] %v5734_v53  ;;  %v2190_v11 = vand.u32 4294901760, %v2189_v61  ;;  %v2201_v46 = vsub.f32 %v5709_v51, %v6690_v57  ;;  %v6694_v13 = vand.u32 4294901760, %v5727_v0  ;;  %v6693_v27 = vand.u32 4294901760, %v5734_v53 }
 0x130   :  { %7030 = vst [vmem:[#allocation40_spill] sm:$0xff] %v5736_v2  ;;  %7031 = vst [vmem:[#allocation44_spill] sm:$0xff] %v5738_v20  ;;  %v2207_v10 = vsub.f32 %v5712_v26, %v7032_v29  ;;  %v2196_v62 = vand.u32 4294901760, %v2195_v41  ;;  %v5750_v14 = vsub.f32 %v1871_v16, %v5736_v2  ;;  %v5753_v31 = vsub.f32 %v1870_v32, %v5738_v20 }
 0x131   :  { %1995 = vmatprep.subr.mxu0 %v5736_v2  ;;  %2191 = vmatprep.subr.mxu1 %v2190_v11  ;;  %v2202_v61 = vand.u32 4294901760, %v2201_v46  ;;  %v2213_v29 = vsub.f32 %v5727_v0, %v6694_v13  ;;  %v2219_v16 = vsub.f32 %v5734_v53, %v6693_v27  ;;  %v6695_v26 = vmov 0.0  }
 0x132   :  { %7033 = vst [vmem:[#allocation45_spill] sm:$0xff] %v5750_v14  ;;  %7034 = vst [vmem:[#allocation46_spill] sm:$0xff] %v5753_v31  ;;  %v2208_v57 = vand.u32 4294901760, %v2207_v10  ;;  %1997 = vmatpush1.msra.mxu0 %v5738_v20  ;;  %2197 = vmatpush1.msra.mxu1 %v2196_v62  ;;  %v6697_v41 = vand.u32 4294901760, %v5750_v14  ;;  %v6704_v32 = vand.u32 4294901760, %v5753_v31 }
 0x133   :  { %2266 = vmatprep.mubr.f32.mxu1 %v6695_v26  ;;  %2203 = vmatprep.subr.mxu1 %v2202_v61  ;;  %v2214_v10 = vand.u32 4294901760, %v2213_v29  ;;  %v2220_v11 = vand.u32 4294901760, %v2219_v16  ;;  %v3740_v29 = vpop.f32.mrf.mxu1 }
 0x134   :  { %2030 = vmatprep.mubr.f32.mxu0 %v6695_v26  ;;  %2209 = vmatpush1.msra.mxu1 %v2208_v57  ;;  %v2225_v62 = vsub.f32 %v5750_v14, %v6697_v41  ;;  %v2231_v46 = vsub.f32 %v5753_v31, %v6704_v32  ;;  %v3705_v57 = vpop.f32.mrf.mxu0 }
 0x135   :  { %2276 = vmatprep.subr.mxu0 %v5456_v49  ;;  %2215 = vmatprep.subr.mxu1 %v2214_v10  ;;  %v3741_v26 = vpop.f32.mrf.mxu1 }
 0x136   :  { %2221 = vmatpush1.msra.mxu1 %v2220_v11  ;;  %v2226_v27 = vand.u32 4294901760, %v2225_v62  ;;  %v2232_v13 = vand.u32 4294901760, %v2231_v46  ;;  %v3706_v61 = vpop.f32.mrf.mxu0  ;;  %v3742_v10 = vadd.f32 %v3741_v26, %v3740_v29 }
 0x137   :  { %v3707_v62 = vadd.f32 %v3706_v61, %v3705_v57 }
 0x138   :  { %2227 = vmatprep.subr.mxu1 %v2226_v27 }
 0x139   :  { %2233 = vmatpush1.msra.mxu1 %v2232_v13  ;;  %v483_v51 = vadd.f32 %v3742_v10, %v3707_v62  ;;  %v7042_v62 = vld [vmem:[#allocation16_spill] sm:$0xff] }
 0x13a   :  { %2412 = vmatprep.subr.mxu1 %v5451_v6 }
 0x141   :  { %v3775_v16 = vpop.f32.mrf.mxu0 }
 0x143   :  { %v3776_v41 = vpop.f32.mrf.mxu0 }
 0x144   :  { %v3777_v46 = vadd.f32 %v3776_v41, %v3775_v16 }
 0x146   :  { %v621_v2 = vadd.f32 %v3777_v46, %v483_v51  ;;  %v7043_v46 = vld [vmem:[#allocation20_spill] sm:$0xff] }
 0x149   :  { %v3810_v14 = vpop.f32.mrf.mxu1 }
 0x14b   :  { %v3811_v0 = vpop.f32.mrf.mxu1 }
 0x14c   :  { %v3812_v6 = vadd.f32 %v3811_v0, %v3810_v14 }
 0x14e   :  { %v729_v40 = vadd.f32 %v3812_v6, %v621_v2 }
 0x162   :  { %v3845_v53 = vpop.f32.mrf.mxu0 }
 0x164   :  { %v3846_v32 = vpop.f32.mrf.mxu0 }
 0x165   :  { %v3847_v19 = vadd.f32 %v3846_v32, %v3845_v53 }
 0x167   :  { %v897_v63 = vadd.f32 %v3847_v19, %v729_v40 }
 0x16b   :  { %v3880_v31 = vpop.f32.mrf.mxu1 }
 0x16d   :  { %v3881_v11 = vpop.f32.mrf.mxu1 }
 0x16e   :  { %v3882_v48 = vadd.f32 %v3881_v11, %v3880_v31 }
 0x170   :  { %v1001_v33 = vadd.f32 %v3882_v48, %v897_v63 }
 0x185   :  { %v3915_v49 = vpop.f32.mrf.mxu0 }
 0x187   :  { %v3916_v27 = vpop.f32.mrf.mxu0 }
 0x188   :  { %v3917_v50 = vadd.f32 %v3916_v27, %v3915_v49  ;;  %v71_v49 = vld [vmem:[#allocation5] sm:$0xf]  ;;  %v7044_v27 = vld [vmem:[#allocation38_spill] sm:$0xff] }
 0x18a   :  { %v1113_v57 = vadd.f32 %v3917_v50, %v1001_v33  ;;  %v7037_v50 = vmov 0.0  }
 0x18e   :  { %v3950_v13 = vpop.f32.mrf.mxu1 }
 0x190   :  { %v3951_v18 = vpop.f32.mrf.mxu1 }
 0x191   :  { %v3952_v26 = vadd.f32 %v3951_v18, %v3950_v13  ;;  %v7040_v18 = vld [vmem:[#allocation30_spill] sm:$0xff]  ;;  %v7045_v13 = vld [vmem:[#allocation31_spill] sm:$0xff] }
 0x193   :  { %v1345_v16 = vadd.f32 %v3952_v26, %v1113_v57  ;;  %v7046_v26 = vld [vmem:[#allocation34_spill] sm:$0xff]  ;;  %v7048_v57 = vld [vmem:[#allocation25_spill] sm:$0xff] }
 0x1a7   :  { %v3985_v20 = vpop.f32.mrf.mxu0 }
 0x1a9   :  { %v3986_v59 = vpop.f32.mrf.mxu0 }
 0x1aa   :  { %v3987_v41 = vadd.f32 %v3986_v59, %v3985_v20  ;;  %v7041_v20 = vld [vmem:[#allocation19_spill] sm:$0xff] }
 0x1ac   :  { %v1483_v0 = vadd.f32 %v3987_v41, %v1345_v16  ;;  %v7049_v41 = vld [vmem:[#allocation29_spill] sm:$0xff]  ;;  %v7051_v16 = vld [vmem:[#allocation35_spill] sm:$0xff] }
 0x1b0   :  { %v4020_v38 = vpop.f32.mrf.mxu1 }
 0x1b2   :  { %v4021_v29 = vpop.f32.mrf.mxu1 }
 0x1b3   :  { %v4022_v10 = vadd.f32 %v4021_v29, %v4020_v38  ;;  %v7047_v29 = vld [vmem:[#allocation33_spill] sm:$0xff] }
 0x1b5   :  { %v1591_v53 = vadd.f32 %v4022_v10, %v1483_v0  ;;  %v7052_v10 = vld [vmem:[#allocation18_spill] sm:$0xff]  ;;  %v7053_v0 = vld [vmem:[#allocation41_spill] sm:$0xff] }
 0x1c9   :  { %v4055_v8 = vpop.f32.mrf.mxu0 }
 0x1cb   :  { %v4056_v61 = vpop.f32.mrf.mxu0 }
 0x1cc   :  { %v4057_v14 = vadd.f32 %v4056_v61, %v4055_v8  ;;  %v7050_v61 = vld [vmem:[#allocation17_spill] sm:$0xff] }
 0x1ce   :  { %v1759_v6 = vadd.f32 %v4057_v14, %v1591_v53  ;;  %v7054_v14 = vld [vmem:[#allocation21_spill] sm:$0xff]  ;;  %v7056_v53 = vld [vmem:[#allocation22_spill] sm:$0xff] }
 0x1d1   :  { %v4090_v51 = vpop.f32.mrf.mxu1 }
 0x1d3   :  { %v4091_v32 = vpop.f32.mrf.mxu1 }
 0x1d4   :  { %v4092_v31 = vadd.f32 %v4091_v32, %v4090_v51  ;;  %v7055_v51 = vld [vmem:[#allocation42_spill] sm:$0xff]  ;;  %v7057_v32 = vld [vmem:[#allocation43_spill] sm:$0xff] }
 0x1d6   :  { %v1863_v2 = vadd.f32 %v4092_v31, %v1759_v6  ;;  %v7058_v6 = vld [vmem:[#allocation23_spill] sm:$0xff]  ;;  %v7059_v31 = vld [vmem:[#allocation40_spill] sm:$0xff] }
 0x1d8   :  { %v1866_v11 = vmul.f32 0.25, %v1863_v2  ;;  %v7060_v2 = vld [vmem:[#allocation24_spill] sm:$0xff] }
 0x1da   :  { %v1867_v19 = vadd.f32 1e-05, %v1866_v11  ;;  %v7061_v11 = vld [vmem:[#allocation44_spill] sm:$0xff] }
 0x1dc   :  { %4105 = vrcp.f32 %v1867_v19  ;;  %v7062_v19 = vld [vmem:[#allocation26_spill] sm:$0xff] }
 0x1e9   :  { %v4106_v48 = vpop.eup %4105 }
 0x1ea   :  { %v1869_v40 = vmul.f32 %v4106_v48, %v71_v49  ;;  %v7063_v49 = vld [vmem:[#allocation15_spill] sm:$0xff]  ;;  %v7064_v48 = vld [vmem:[#allocation28_spill] sm:$0xff] }
 0x1ec   :  { %v5775_v63 = vand.u32 4294901760, %v1869_v40 }
 0x1ee   :  { %7035 = vst [vmem:[#allocation47_spill] sm:$0xff] %v5775_v63  ;;  %2268 = vmatmul.mubr.f32.vlgmr.msra.gmra.mxu1 %v5775_v63  ;;  %v5779_v33 = vsub.f32 %v1869_v40, %v5775_v63  ;;  %v7065_v40 = vld [vmem:[#allocation36_spill] sm:$0xff]  ;;  %v7068_v63 = vld [vmem:[#allocation27_spill] sm:$0xff] }
 0x1ef   :  { %2414 = vmatpush1.msra.mxu1 %v5453_v4  ;;  %2507 = vmatprep.mubr.f32.mxu1 %v7037_v50 }
 0x1f0   :  { %7036 = vst [vmem:[#allocation48_spill] sm:$0xff] %v5779_v33  ;;  %2416 = vmatprep.subr.mxu1 %v5458_v1  ;;  %v5785_v38 = vand.u32 4294901760, %v5779_v33 }
 0x1f1   :  { %2418 = vmatpush1.msra.mxu1 %v5464_v47 }
 0x1f2   :  { %7038 = vst [vmem:[#allocation49_spill] sm:$0xff] %v5785_v38  ;;  %2420 = vmatprep.subr.mxu1 %v5471_v39  ;;  %v2034_v59 = vsub.f32 %v5779_v33, %v5785_v38 }
 0x1f3   :  { %2422 = vmatpush1.msra.mxu1 %v5478_v23 }
 0x1f4   :  { %2424 = vmatprep.subr.mxu1 %v5488_v44  ;;  %v5793_v8 = vand.u32 4294901760, %v2034_v59  ;;  %v7066_v59 = vld [vmem:[#allocation37_spill] sm:$0xff] }
 0x1f5   :  { %2426 = vmatpush1.msra.mxu1 %v5498_v17 }
 0x1f6   :  { %7039 = vst [vmem:[#allocation50_spill] sm:$0xff] %v5793_v8  ;;  %2428 = vmatprep.subr.mxu1 %v5524_v34  ;;  %2036 = vmatmul.mubr.f32.vlgmr.msra.gmra.mxu0 %v5793_v8  ;;  %v7067_v8 = vld [vmem:[#allocation39_spill] sm:$0xff] }
 0x1f7   :  { %2279 = vmatpush1.msra.mxu0 %v5462_v3  ;;  %2430 = vmatpush1.msra.mxu1 %v5530_v55 }
 0x1f8   :  { %2282 = vmatprep.subr.mxu0 %v5469_v9  ;;  %2432 = vmatprep.subr.mxu1 %v5535_v54 }
 0x1f9   :  { %2285 = vmatpush1.msra.mxu0 %v5476_v36  ;;  %2434 = vmatpush1.msra.mxu1 %v5537_v22 }
 0x1fa   :  { %2288 = vmatprep.subr.mxu0 %v5486_v30  ;;  %2436 = vmatprep.subr.mxu1 %v5546_v5 }
 0x1fb   :  { %2291 = vmatpush1.msra.mxu0 %v5496_v7  ;;  %2438 = vmatpush1.msra.mxu1 %v5556_v24 }
 0x1fc   :  { %2294 = vmatprep.subr.mxu0 %v5506_v56  ;;  %2440 = vmatprep.subr.mxu1 %v5563_v52 }
 0x1fd   :  { %2297 = vmatpush1.msra.mxu0 %v5519_v15  ;;  %2442 = vmatpush1.msra.mxu1 %v5582_v12 }
 0x1fe   :  { %2300 = vmatprep.subr.mxu0 %v5533_v25  ;;  %2444 = vmatprep.subr.mxu1 %v5604_v58 }
 0x1ff   :  { %2303 = vmatpush1.msra.mxu0 %v5544_v43  ;;  %2446 = vmatpush1.msra.mxu1 %v5610_v60 }
 0x200   :  { %2306 = vmatprep.subr.mxu0 %v5551_v45  ;;  %2448 = vmatprep.subr.mxu1 %v5615_v37 }
 0x201   :  { %2309 = vmatpush1.msra.mxu0 %v5554_v28  ;;  %2450 = vmatpush1.msra.mxu1 %v5617_v21 }
 0x202   :  { %2312 = vmatprep.subr.mxu0 %v5561_v42  ;;  %2452 = vmatprep.subr.mxu1 %v5626_v35 }
 0x203   :  { %2315 = vmatpush1.msra.mxu0 %v7040_v18  ;;  %2454 = vmatpush1.msra.mxu1 %v7041_v20 }
 0x204   :  { %2318 = vmatprep.subr.mxu0 %v7042_v62  ;;  %2456 = vmatprep.subr.mxu1 %v7043_v46 }
 0x205   :  { %2321 = vmatpush1.msra.mxu0 %v7044_v27  ;;  %2458 = vmatpush1.msra.mxu1 %v7045_v13 }
 0x206   :  { %2324 = vmatprep.subr.mxu0 %v7046_v26  ;;  %2460 = vmatprep.subr.mxu1 %v7047_v29 }
 0x207   :  { %2327 = vmatpush1.msra.mxu0 %v7048_v57  ;;  %2462 = vmatpush1.msra.mxu1 %v7049_v41 }
 0x208   :  { %2330 = vmatprep.subr.mxu0 %v7050_v61  ;;  %2464 = vmatprep.subr.mxu1 %v7051_v16 }
 0x209   :  { %2333 = vmatpush1.msra.mxu0 %v7052_v10  ;;  %2466 = vmatpush1.msra.mxu1 %v7053_v0 }
 0x20a   :  { %2336 = vmatprep.subr.mxu0 %v7054_v14  ;;  %2468 = vmatprep.subr.mxu1 %v7055_v51 }
 0x20b   :  { %2339 = vmatpush1.msra.mxu0 %v7056_v53  ;;  %2470 = vmatpush1.msra.mxu1 %v7057_v32 }
 0x20c   :  { %2342 = vmatprep.subr.mxu0 %v7058_v6  ;;  %2472 = vmatprep.subr.mxu1 %v7059_v31 }
 0x20d   :  { %2345 = vmatpush1.msra.mxu0 %v7060_v2  ;;  %2474 = vmatpush1.msra.mxu1 %v7061_v11 }
 0x20e   :  { %2348 = vmatprep.subr.mxu0 %v7062_v19  ;;  %2511 = vmatmul.mubr.f32.vlgmr.msra.gmra.mxu1 %v5785_v38 }
 0x20f   :  { %2686 = vmatprep.subr.mxu1 %v7063_v49  ;;  %2351 = vmatpush1.msra.mxu0 %v7064_v48  ;;  %v7069_v49 = vld [vmem:[#allocation45_spill] sm:$0xff] }
 0x210   :  { %2688 = vmatpush1.msra.mxu1 %v5453_v4  ;;  %2354 = vmatprep.subr.mxu0 %v7065_v40  ;;  %v7070_v4 = vld [vmem:[#allocation46_spill] sm:$0xff] }
 0x211   :  { %2690 = vmatprep.subr.mxu1 %v5458_v1  ;;  %2357 = vmatpush1.msra.mxu0 %v7066_v59  ;;  %v1933_v1 = vld [vmem:[#allocation8 + $0x1f8] sm:$0xff] }
 0x212   :  { %2692 = vmatpush1.msra.mxu1 %v5464_v47  ;;  %2360 = vmatprep.subr.mxu0 %v7067_v8  ;;  %v7071_v47 = vld [vmem:[#allocation32_spill] sm:$0xff] }
 0x213   :  { %2694 = vmatprep.subr.mxu1 %v5471_v39  ;;  %2363 = vmatpush1.msra.mxu0 %v7068_v63  ;;  %v7072_v38 = vand.u32 4294901760, %v7071_v47  ;;  %v7073_v39 = vand.u32 4294901760, %v5462_v3  ;;  %v7076_v3 = vand.u32 4294901760, %v5486_v30 }
 0x214   :  { %2696 = vmatpush1.msra.mxu1 %v5478_v23  ;;  %2366 = vmatprep.subr.mxu0 %v7069_v49  ;;  %v1932_v23 = vld [vmem:[#allocation8 + $0x1f0] sm:$0xff] }
 0x215   :  { %2698 = vmatprep.subr.mxu1 %v5488_v44  ;;  %2369 = vmatpush1.msra.mxu0 %v7070_v4  ;;  %v7074_v44 = vand.u32 4294901760, %v5469_v9  ;;  %v5871_v4 = vand.u32 4294901760, %v1933_v1  ;;  %v7077_v9 = vand.u32 4294901760, %v5496_v7 }
 0x216   :  { %2402 = vmatprep.mubr.f32.mxu0 %v7037_v50  ;;  %2700 = vmatpush1.msra.mxu1 %v5498_v17  ;;  %v1929_v17 = vld [vmem:[#allocation8 + $0x1d8] sm:$0xff] }
 0x217   :  { %2405 = vmatmul.mubr.f32.vlgmr.msra.gmra.mxu0 %v5779_v33  ;;  %2520 = vmatprep.subr.mxu0 %v7072_v38  ;;  %v7075_v33 = vand.u32 4294901760, %v5476_v36  ;;  %v1928_v38 = vld [vmem:[#allocation8 + $0x1d0] sm:$0xff]  ;;  %v5884_v47 = vand.u32 4294901760, %v1929_v17  ;;  %v7078_v36 = vand.u32 4294901760, %v5506_v56 }
 0x218   :  { %2702 = vmatprep.subr.mxu1 %v5524_v34  ;;  %2524 = vmatpush1.msra.mxu0 %v7073_v39  ;;  %v5879_v34 = vand.u32 4294901760, %v1932_v23  ;;  %v5892_v30 = vand.u32 4294901760, %v1928_v38  ;;  %v1920_v39 = vld [vmem:[#allocation8 + $0x190] sm:$0xff] }
 0x219   :  { %2704 = vmatpush1.msra.mxu1 %v5530_v55  ;;  %2528 = vmatprep.subr.mxu0 %v7074_v44  ;;  %v1925_v55 = vld [vmem:[#allocation8 + $0x1b8] sm:$0xff] }
 0x21a   :  { %2706 = vmatprep.subr.mxu1 %v5535_v54  ;;  %2532 = vmatpush1.msra.mxu0 %v7075_v33  ;;  %v1924_v54 = vld [vmem:[#allocation8 + $0x1b0] sm:$0xff]  ;;  %v1921_v33 = vld [vmem:[#allocation8 + $0x198] sm:$0xff]  ;;  %v5897_v7 = vand.u32 4294901760, %v1925_v55  ;;  %v5903_v56 = vsub.f32 %v1932_v23, %v5879_v34 }
 0x21b   :  { %2708 = vmatpush1.msra.mxu1 %v5537_v22  ;;  %2536 = vmatprep.subr.mxu0 %v7076_v3  ;;  %v5890_v22 = vsub.f32 %v1933_v1, %v5871_v4  ;;  %v5905_v1 = vand.u32 4294901760, %v1924_v54  ;;  %v1917_v44 = vld [vmem:[#allocation8 + $0x178] sm:$0xff]  ;;  %v5913_v3 = vand.u32 4294901760, %v1921_v33 }
 0x21c   :  { %2710 = vmatprep.subr.mxu1 %v5546_v5  ;;  %2540 = vmatpush1.msra.mxu0 %v7077_v9  ;;  %v7079_v5 = vand.u32 4294901760, %v5519_v15  ;;  %7081 = vst [vmem:[#allocation30_spill] sm:$0xff] %v5903_v56  ;;  %v5911_v15 = vsub.f32 %v1929_v17, %v5884_v47  ;;  %v5920_v9 = vsub.f32 %v1928_v38, %v5892_v30  ;;  %v7086_v17 = vand.u32 4294901760, %v5554_v28  ;;  %v1909_v28 = vld [vmem:[#allocation8 + $0x138] sm:$0xff] }
 0x21d   :  { %2712 = vmatpush1.msra.mxu1 %v5556_v24  ;;  %2544 = vmatprep.subr.mxu0 %v7078_v36  ;;  %v7080_v24 = vand.u32 4294901760, %v5533_v25  ;;  %v7084_v25 = vand.u32 4294901760, %v5551_v45  ;;  %v6740_v23 = vand.u32 4294901760, %v5890_v22  ;;  %v5928_v36 = vsub.f32 %v1925_v55, %v5897_v7  ;;  %v1912_v45 = vld [vmem:[#allocation8 + $0x150] sm:$0xff] }
 0x21e   :  { %2714 = vmatprep.subr.mxu1 %v5563_v52  ;;  %2548 = vmatpush1.msra.mxu0 %v7079_v5  ;;  %v7082_v52 = vand.u32 4294901760, %v5544_v43  ;;  %7083 = vst [vmem:[#allocation19_spill] sm:$0xff] %v5911_v15  ;;  %7085 = vst [vmem:[#allocation16_spill] sm:$0xff] %v5920_v9  ;;  %v1913_v43 = vld [vmem:[#allocation8 + $0x158] sm:$0xff]  ;;  %v7088_v5 = vand.u32 4294901760, %v5561_v42  ;;  %v6741_v38 = vand.u32 4294901760, %v5903_v56 }
 0x21f   :  { %2716 = vmatpush1.msra.mxu1 %v5582_v12  ;;  %2552 = vmatprep.subr.mxu0 %v7080_v24  ;;  %v1916_v12 = vld [vmem:[#allocation8 + $0x170] sm:$0xff]  ;;  %7087 = vst [vmem:[#allocation20_spill] sm:$0xff] %v5928_v36  ;;  %v5937_v24 = vsub.f32 %v1924_v54, %v5905_v1  ;;  %v7090_v55 = vand.u32 4294901760, %v7040_v18  ;;  %v5948_v42 = vand.u32 4294901760, %v1913_v43  ;;  %v7092_v54 = vand.u32 4294901760, %v7042_v62 }
 0x220   :  { %2718 = vmatprep.subr.mxu1 %v5604_v58  ;;  %2556 = vmatpush1.msra.mxu0 %v7082_v52  ;;  %v5922_v58 = vand.u32 4294901760, %v1920_v39  ;;  %v6742_v52 = vand.u32 4294901760, %v5911_v15  ;;  %v6743_v18 = vand.u32 4294901760, %v5920_v9  ;;  %v6744_v62 = vand.u32 4294901760, %v5928_v36 }
 0x221   :  { %2720 = vmatpush1.msra.mxu1 %v5610_v60  ;;  %2560 = vmatprep.subr.mxu0 %v7084_v25  ;;  %v5930_v60 = vand.u32 4294901760, %v1917_v44  ;;  %7089 = vst [vmem:[#allocation38_spill] sm:$0xff] %v5937_v24  ;;  %v1908_v25 = vld [vmem:[#allocation8 + $0x130] sm:$0xff] }
 0x222   :  { %2722 = vmatprep.subr.mxu1 %v5615_v37  ;;  %2564 = vmatpush1.msra.mxu0 %v7086_v17  ;;  %v5939_v37 = vand.u32 4294901760, %v1916_v12  ;;  %v5960_v17 = vsub.f32 %v1920_v39, %v5922_v58  ;;  %v7096_v39 = vand.u32 4294901760, %v7046_v26  ;;  %v5993_v26 = vsub.f32 %v5911_v15, %v6742_v52 }
 0x223   :  { %2724 = vmatpush1.msra.mxu1 %v5617_v21  ;;  %2568 = vmatprep.subr.mxu0 %v7088_v5  ;;  %v5946_v21 = vsub.f32 %v1921_v33, %v5913_v3  ;;  %v5962_v33 = vand.u32 4294901760, %v1912_v45  ;;  %v1905_v5 = vld [vmem:[#allocation8 + $0x118] sm:$0xff] }
 0x224   :  { %2726 = vmatprep.subr.mxu1 %v5626_v35  ;;  %2572 = vmatpush1.msra.mxu0 %v7090_v55  ;;  %v5956_v35 = vsub.f32 %v5890_v22, %v6740_v23  ;;  %7093 = vst [vmem:[#allocation34_spill] sm:$0xff] %v5960_v17  ;;  %v5969_v55 = vsub.f32 %v1917_v44, %v5930_v60  ;;  %v1904_v44 = vld [vmem:[#allocation8 + $0x110] sm:$0xff] }
 0x225   :  { %7091 = vst [vmem:[#allocation31_spill] sm:$0xff] %v5946_v21  ;;  %2728 = vmatpush1.msra.mxu1 %v7041_v20  ;;  %2576 = vmatprep.subr.mxu0 %v7092_v54  ;;  %v7094_v20 = vand.u32 4294901760, %v7044_v27  ;;  %v5971_v54 = vand.u32 4294901760, %v1909_v28  ;;  %v5979_v23 = vsub.f32 %v5903_v56, %v6741_v38  ;;  %v5983_v27 = vsub.f32 %v1916_v12, %v5939_v37 }
 0x226   :  { %2730 = vmatprep.subr.mxu1 %v7043_v46  ;;  %7095 = vst [vmem:[#allocation33_spill] sm:$0xff] %v5969_v55  ;;  %v5997_v38 = vsub.f32 %v1913_v43, %v5948_v42  ;;  %v5999_v12 = vand.u32 4294901760, %v1905_v5  ;;  %v7100_v46 = vand.u32 4294901760, %v7050_v61  ;;  %v6012_v52 = vsub.f32 %v1912_v45, %v5962_v33  ;;  %2781 = vmatprep.mubr.f32.mxu1 %v7037_v50 }
 0x227   :  { %2580 = vmatpush1.msra.mxu0 %v7094_v20  ;;  %2732 = vmatpush1.msra.mxu1 %v7045_v13  ;;  %7097 = vst [vmem:[#allocation25_spill] sm:$0xff] %v5983_v27  ;;  %v5985_v20 = vand.u32 4294901760, %v1908_v25  ;;  %v7098_v13 = vand.u32 4294901760, %v7048_v57  ;;  %v6008_v57 = vsub.f32 %v5920_v9, %v6743_v18  ;;  %v7102_v43 = vand.u32 4294901760, %v7052_v10  ;;  %v1901_v18 = vld [vmem:[#allocation8 + $0xf8] sm:$0xff] }
 0x228   :  { %2584 = vmatprep.subr.mxu0 %v7096_v39  ;;  %2734 = vmatprep.subr.mxu1 %v7047_v29  ;;  %v6745_v39 = vand.u32 4294901760, %v5946_v21  ;;  %7099 = vst [vmem:[#allocation29_spill] sm:$0xff] %v5997_v38  ;;  %v2901_v29 = vand.u32 4294901760, %v5956_v35  ;;  %7101 = vst [vmem:[#allocation17_spill] sm:$0xff] %v6012_v52  ;;  %v6024_v35 = vsub.f32 %v1909_v28, %v5971_v54  ;;  %v2907_v10 = vand.u32 4294901760, %v5979_v23 }
 0x229   :  { %2588 = vmatpush1.msra.mxu0 %v7098_v13  ;;  %2736 = vmatpush1.msra.mxu1 %v7049_v41  ;;  %v6746_v13 = vand.u32 4294901760, %v5960_v17  ;;  %v6020_v41 = vsub.f32 %v5928_v36, %v6744_v62  ;;  %v7105_v45 = vand.u32 4294901760, %v5937_v24  ;;  %v6747_v62 = vand.u32 4294901760, %v5983_v27 }
 0x22a   :  { %2592 = vmatprep.subr.mxu0 %v7100_v46  ;;  %2738 = vmatprep.subr.mxu1 %v7051_v16  ;;  %7103 = vst [vmem:[#allocation35_spill] sm:$0xff] %v6024_v35  ;;  %v6026_v46 = vand.u32 4294901760, %v1904_v44  ;;  %v7104_v16 = vand.u32 4294901760, %v7054_v14  ;;  %v6039_v28 = vsub.f32 %v1908_v25, %v5985_v20  ;;  %v7107_v61 = vand.u32 4294901760, %v7056_v53 }
 0x22b   :  { %2596 = vmatpush1.msra.mxu0 %v7102_v43  ;;  %2740 = vmatpush1.msra.mxu1 %v7053_v0  ;;  %v6035_v43 = vsub.f32 %v5937_v24, %v7105_v45  ;;  %v2913_v0 = vand.u32 4294901760, %v5993_v26  ;;  %v6048_v14 = vsub.f32 %v5946_v21, %v6745_v39  ;;  %v6754_v23 = vand.u32 4294901760, %v5997_v38  ;;  %v1900_v45 = vld [vmem:[#allocation8 + $0xf0] sm:$0xff]  ;;  %v1897_v39 = vld [vmem:[#allocation8 + $0xd8] sm:$0xff] }
 0x22c   :  { %2600 = vmatprep.subr.mxu0 %v7104_v16  ;;  %7106 = vst [vmem:[#allocation18_spill] sm:$0xff] %v6039_v28  ;;  %2742 = vmatprep.subr.mxu1 %v7055_v51  ;;  %v6052_v16 = vsub.f32 %v1905_v5, %v5999_v12  ;;  %v7109_v51 = vand.u32 4294901760, %v7058_v6  ;;  %v2919_v53 = vand.u32 4294901760, %v6008_v57  ;;  %v6061_v25 = vsub.f32 %v5960_v17, %v6746_v13  ;;  %v1896_v26 = vld [vmem:[#allocation8 + $0xd0] sm:$0xff] }
 0x22d   :  { %2604 = vmatpush1.msra.mxu0 %v7107_v61  ;;  %2744 = vmatpush1.msra.mxu1 %v7057_v32  ;;  %v6064_v61 = vand.u32 4294901760, %v1901_v18  ;;  %v7110_v5 = vand.u32 4294901760, %v7060_v2  ;;  %v2925_v32 = vand.u32 4294901760, %v6020_v41  ;;  %v7111_v6 = vand.u32 4294901760, %v5969_v55  ;;  %v1892_v41 = vld [vmem:[#allocation8 + $0xb0] sm:$0xff] }
 0x22e   :  { %7108 = vst [vmem:[#allocation41_spill] sm:$0xff] %v6052_v16  ;;  %2608 = vmatprep.subr.mxu0 %v7109_v51  ;;  %2746 = vmatprep.subr.mxu1 %v7059_v31  ;;  %v6077_v13 = vsub.f32 %v1904_v44, %v6026_v46  ;;  %v2931_v31 = vand.u32 4294901760, %v6035_v43  ;;  %v6085_v2 = vsub.f32 %v5983_v27, %v6747_v62  ;;  %v7113_v44 = vand.u32 4294901760, %v7062_v19  ;;  %v7114_v51 = vld [vmem:[#allocation47_spill] sm:$0xff]  ;;  %v1889_v62 = vld [vmem:[#allocation8 + $0x98] sm:$0xff] }
 0x22f   :  { %2612 = vmatpush1.msra.mxu0 %v7110_v5  ;;  %v6073_v57 = vsub.f32 %v5969_v55, %v7111_v6  ;;  %2748 = vmatpush1.msra.mxu1 %v7061_v11  ;;  %v6088_v5 = vand.u32 4294901760, %v1900_v45  ;;  %v1893_v6 = vld [vmem:[#allocation8 + $0xb8] sm:$0xff]  ;;  %v2937_v11 = vand.u32 4294901760, %v6048_v14  ;;  %v6097_v43 = vsub.f32 %v5997_v38, %v6754_v23 }
 0x230   :  { %7112 = vst [vmem:[#allocation21_spill] sm:$0xff] %v6077_v13  ;;  %2616 = vmatprep.subr.mxu0 %v7113_v44  ;;  %2783 = vmatmul.mubr.f32.vlgmr.msra.gmra.mxu1 %v7114_v51  ;;  %v6100_v27 = vand.u32 4294901760, %v1897_v39  ;;  %v7115_v55 = vand.u32 4294901760, %v7064_v48  ;;  %v2943_v19 = vand.u32 4294901760, %v6061_v25  ;;  %v7116_v44 = vand.u32 4294901760, %v6012_v52  ;;  %v1885_v25 = vld [vmem:[#allocation8 + $0x78] sm:$0xff] }
 0x231   :  { %2902 = vmatprep.subr.mxu1 %v2901_v29  ;;  %v6111_v17 = vsub.f32 %v1901_v18, %v6064_v61  ;;  %v6113_v23 = vand.u32 4294901760, %v1896_v26  ;;  %v7118_v38 = vand.u32 4294901760, %v7065_v40  ;;  %v2949_v48 = vand.u32 4294901760, %v6073_v57  ;;  %v1888_v18 = vld [vmem:[#allocation8 + $0x90] sm:$0xff]  ;;  %2677 = vmatprep.mubr.f32.mxu0 %v7037_v50 }
 0x232   :  { %2620 = vmatpush1.msra.mxu0 %v7115_v55  ;;  %v6108_v14 = vsub.f32 %v6012_v52, %v7116_v44  ;;  %2908 = vmatpush1.msra.mxu1 %v2907_v10  ;;  %v7119_v55 = vand.u32 4294901760, %v6024_v35  ;;  %v6124_v44 = vand.u32 4294901760, %v1893_v6  ;;  %v7121_v52 = vand.u32 4294901760, %v7066_v59 }
 0x233   :  { %7117 = vst [vmem:[#allocation42_spill] sm:$0xff] %v6111_v17  ;;  %2624 = vmatprep.subr.mxu0 %v7118_v38  ;;  %2914 = vmatprep.subr.mxu1 %v2913_v0  ;;  %v2955_v10 = vand.u32 4294901760, %v6085_v2  ;;  %v7122_v40 = vand.u32 4294901760, %v6039_v28  ;;  %v6135_v57 = vsub.f32 %v1900_v45, %v6088_v5  ;;  %v2961_v59 = vand.u32 4294901760, %v6097_v43  ;;  %v1884_v45 = vld [vmem:[#allocation8 + $0x70] sm:$0xff] }
 0x234   :  { %v6121_v29 = vsub.f32 %v6024_v35, %v7119_v55  ;;  %7120 = vst [vmem:[#allocation22_spill] sm:$0xff] %v6124_v44  ;;  %2628 = vmatpush1.msra.mxu0 %v7121_v52  ;;  %v6137_v55 = vand.u32 4294901760, %v1892_v41  ;;  %2920 = vmatpush1.msra.mxu1 %v2919_v53  ;;  %v7124_v35 = vand.u32 4294901760, %v7067_v8  ;;  %v7125_v52 = vand.u32 4294901760, %v6052_v16 }
 0x235   :  { %v6132_v38 = vsub.f32 %v6039_v28, %v7122_v40  ;;  %7123 = vst [vmem:[#allocation43_spill] sm:$0xff] %v6135_v57  ;;  %v6148_v2 = vsub.f32 %v1897_v39, %v6100_v27  ;;  %v6150_v40 = vand.u32 4294901760, %v1889_v62  ;;  %2926 = vmatprep.subr.mxu1 %v2925_v32  ;;  %v7127_v28 = vand.u32 4294901760, %v7068_v63  ;;  %3121 = vmatprep.mubr.f32.mxu1 %v7037_v50 }
 0x236   :  { %2632 = vmatprep.subr.mxu0 %v7124_v35  ;;  %v6145_v0 = vsub.f32 %v6052_v16, %v7125_v52  ;;  %v2967_v8 = vand.u32 4294901760, %v6108_v14  ;;  %v6157_v53 = vsub.f32 %v1896_v26, %v6113_v23  ;;  %v6159_v43 = vand.u32 4294901760, %v1888_v18  ;;  %v1881_v52 = vld [vmem:[#allocation8 + $0x58] sm:$0xff]  ;;  %2932 = vmatpush1.msra.mxu1 %v2931_v31  ;;  %v1880_v26 = vld [vmem:[#allocation8 + $0x50] sm:$0xff]  ;;  %v7130_v35 = vld [vmem:[#allocation46_spill] sm:$0xff] }
 0x237   :  { %7126 = vst [vmem:[#allocation23_spill] sm:$0xff] %v6148_v2  ;;  %2636 = vmatpush1.msra.mxu0 %v7127_v28  ;;  %v7128_v39 = vand.u32 4294901760, %v7069_v49  ;;  %v2973_v16 = vand.u32 4294901760, %v6121_v29  ;;  %v7129_v32 = vand.u32 4294901760, %v6077_v13  ;;  %v6170_v28 = vsub.f32 %v1893_v6, %v6124_v44  ;;  %2938 = vmatprep.subr.mxu1 %v2937_v11 }
 0x238   :  { %v6172_v14 = vand.u32 4294901760, %v1885_v25  ;;  %v7131_v21 = vand.u32 4294901760, %v7130_v35  ;;  %v2979_v49 = vand.u32 4294901760, %v6132_v38  ;;  %v6179_v29 = vsub.f32 %v1892_v41, %v6137_v55  ;;  %2944 = vmatpush1.msra.mxu1 %v2943_v19  ;;  %v1876_v38 = vld [vmem:[#allocation8 + $0x30] sm:$0xff] }
 0x239   :  { %2640 = vmatprep.subr.mxu0 %v7128_v39  ;;  %v6167_v63 = vsub.f32 %v6077_v13, %v7129_v32  ;;  %v6181_v39 = vand.u32 4294901760, %v1884_v45  ;;  %v1877_v32 = vld [vmem:[#allocation8 + $0x38] sm:$0xff]  ;;  %v2985_v6 = vand.u32 4294901760, %v6145_v0  ;;  %v6187_v35 = vsub.f32 %v1889_v62, %v6150_v40  ;;  %2950 = vmatprep.subr.mxu1 %v2949_v48 }
 0x23a   :  { %2644 = vmatpush1.msra.mxu0 %v7131_v21  ;;  %v6189_v21 = vand.u32 4294901760, %v1881_v52  ;;  %v7132_v41 = vand.u32 4294901760, %v6111_v17  ;;  %v6198_v0 = vsub.f32 %v1888_v18, %v6159_v43  ;;  %v6200_v11 = vand.u32 4294901760, %v1880_v26  ;;  %v1873_v62 = vld [vmem:[#allocation8 + $0x18] sm:$0xff]  ;;  %2956 = vmatpush1.msra.mxu1 %v2955_v10 }
 0x23b   :  { %2679 = vmatmul.mubr.f32.vlgmr.msra.gmra.mxu0 %v7114_v51  ;;  %2790 = vmatprep.subr.mxu0 %v5871_v4  ;;  %v2991_v13 = vand.u32 4294901760, %v6167_v63  ;;  %v6206_v36 = vsub.f32 %v1885_v25, %v6172_v14  ;;  %v6208_v9 = vand.u32 4294901760, %v1877_v32  ;;  %v7134_v18 = vand.u32 4294901760, %v6135_v57 }
 0x23c   :  { %v2996_v31 = vsub.f32 %v6111_v17, %v7132_v41  ;;  %7133 = vst [vmem:[#allocation40_spill] sm:$0xff] %v6200_v11  ;;  %2792 = vmatpush1.msra.mxu0 %v5879_v34  ;;  %v1872_v41 = vld [vmem:[#allocation8 + $0x10] sm:$0xff]  ;;  %v6216_v17 = vsub.f32 %v1884_v45, %v6181_v39  ;;  %v6218_v63 = vand.u32 4294901760, %v1876_v38  ;;  %2962 = vmatprep.subr.mxu1 %v2961_v59  ;;  %v7135_v25 = vand.u32 4294901760, %v6148_v2 }
 0x23d   :  { %2794 = vmatprep.subr.mxu0 %v5884_v47  ;;  %v3002_v19 = vsub.f32 %v6135_v57, %v7134_v18  ;;  %v6226_v15 = vsub.f32 %v1881_v52, %v6189_v21  ;;  %v6228_v18 = vand.u32 4294901760, %v1873_v62  ;;  %2968 = vmatpush1.msra.mxu1 %v2967_v8  ;;  %v7136_v45 = vand.u32 4294901760, %v6157_v53 }
 0x23e   :  { %2796 = vmatpush1.msra.mxu0 %v5892_v30  ;;  %v3008_v10 = vsub.f32 %v6148_v2, %v7135_v25  ;;  %v6236_v57 = vsub.f32 %v1880_v26, %v6200_v11  ;;  %v6238_v25 = vand.u32 4294901760, %v1872_v41  ;;  %2974 = vmatprep.subr.mxu1 %v2973_v16  ;;  %v2997_v52 = vand.u32 4294901760, %v2996_v31 }
 0x23f   :  { %2798 = vmatprep.subr.mxu0 %v5897_v7  ;;  %v3014_v59 = vsub.f32 %v6157_v53, %v7136_v45  ;;  %v7137_v24 = vand.u32 4294901760, %v6170_v28  ;;  %v6246_v56 = vsub.f32 %v1877_v32, %v6208_v9  ;;  %2980 = vmatpush1.msra.mxu1 %v2979_v49  ;;  %v3003_v26 = vand.u32 4294901760, %v3002_v19 }
 0x240   :  { %2800 = vmatpush1.msra.mxu0 %v5905_v1  ;;  %v7138_v45 = vand.u32 4294901760, %v6179_v29  ;;  %v6254_v31 = vsub.f32 %v1876_v38, %v6218_v63  ;;  %2986 = vmatprep.subr.mxu1 %v2985_v6  ;;  %v7139_v32 = vand.u32 4294901760, %v6187_v35  ;;  %v6262_v19 = vsub.f32 %v1873_v62, %v6228_v18 }
 0x241   :  { %v3020_v8 = vsub.f32 %v6170_v28, %v7137_v24  ;;  %2802 = vmatprep.subr.mxu0 %v5913_v3  ;;  %v3009_v24 = vand.u32 4294901760, %v3008_v10  ;;  %2992 = vmatpush1.msra.mxu1 %v2991_v13  ;;  %v7140_v38 = vand.u32 4294901760, %v6198_v0  ;;  %v6270_v10 = vsub.f32 %v1872_v41, %v6238_v25 }
 0x242   :  { %v3026_v16 = vsub.f32 %v6179_v29, %v7138_v45  ;;  %2804 = vmatpush1.msra.mxu0 %v5922_v58  ;;  %v3032_v49 = vsub.f32 %v6187_v35, %v7139_v32  ;;  %v3015_v45 = vand.u32 4294901760, %v3014_v59  ;;  %2998 = vmatprep.subr.mxu1 %v2997_v52  ;;  %v7141_v62 = vand.u32 4294901760, %v6206_v36 }
 0x243   :  { %2806 = vmatprep.subr.mxu0 %v5930_v60  ;;  %v3038_v6 = vsub.f32 %v6198_v0, %v7140_v38  ;;  %v3021_v32 = vand.u32 4294901760, %v3020_v8  ;;  %3004 = vmatpush1.msra.mxu1 %v3003_v26  ;;  %v7142_v38 = vand.u32 4294901760, %v6216_v17  ;;  %v7143_v8 = vand.u32 4294901760, %v6226_v15 }
 0x244   :  { %2808 = vmatpush1.msra.mxu0 %v5939_v37  ;;  %v3044_v13 = vsub.f32 %v6206_v36, %v7141_v62  ;;  %v3027_v59 = vand.u32 4294901760, %v3026_v16  ;;  %3010 = vmatprep.subr.mxu1 %v3009_v24  ;;  %v3033_v52 = vand.u32 4294901760, %v3032_v49  ;;  %v7144_v16 = vand.u32 4294901760, %v6236_v57 }
 0x245   :  { %2810 = vmatprep.subr.mxu0 %v5948_v42  ;;  %v3050_v48 = vsub.f32 %v6216_v17, %v7142_v38  ;;  %v3056_v62 = vsub.f32 %v6226_v15, %v7143_v8  ;;  %3016 = vmatpush1.msra.mxu1 %v3015_v45  ;;  %v3039_v26 = vand.u32 4294901760, %v3038_v6  ;;  %v6785_v41 = vand.u32 4294901760, %v6270_v10 }
 0x246   :  { %2812 = vmatpush1.msra.mxu0 %v5962_v33  ;;  %v3062_v38 = vsub.f32 %v6236_v57, %v7144_v16  ;;  %3022 = vmatprep.subr.mxu1 %v3021_v32  ;;  %v3045_v24 = vand.u32 4294901760, %v3044_v13  ;;  %v7145_v49 = vand.u32 4294901760, %v6246_v56  ;;  %v7146_v6 = vand.u32 4294901760, %v6254_v31 }
 0x247   :  { %2814 = vmatprep.subr.mxu0 %v5971_v54  ;;  %3028 = vmatpush1.msra.mxu1 %v3027_v59  ;;  %v3051_v45 = vand.u32 4294901760, %v3050_v48  ;;  %v3057_v16 = vand.u32 4294901760, %v3056_v62  ;;  %v7147_v32 = vand.u32 4294901760, %v6262_v19  ;;  %v3086_v48 = vsub.f32 %v6270_v10, %v6785_v41  ;;  %v7164_v41 = vld [vmem:[#allocation42_spill] sm:$0xff] }
 0x248   :  { %2816 = vmatpush1.msra.mxu0 %v5985_v20  ;;  %v3068_v8 = vsub.f32 %v6246_v56, %v7145_v49  ;;  %v3074_v2 = vsub.f32 %v6254_v31, %v7146_v6  ;;  %3034 = vmatprep.subr.mxu1 %v3033_v52  ;;  %v3063_v49 = vand.u32 4294901760, %v3062_v38  ;;  %v7149_v38 = vld [vmem:[#allocation30_spill] sm:$0xff] }
 0x249   :  { %2818 = vmatprep.subr.mxu0 %v5999_v12  ;;  %v3080_v13 = vsub.f32 %v6262_v19, %v7147_v32  ;;  %3040 = vmatpush1.msra.mxu1 %v3039_v26  ;;  %v3087_v26 = vand.u32 4294901760, %v3086_v48  ;;  %v7153_v6 = vld [vmem:[#allocation38_spill] sm:$0xff]  ;;  %v7158_v48 = vld [vmem:[#allocation29_spill] sm:$0xff] }
 0x24a   :  { %2820 = vmatpush1.msra.mxu0 %v6026_v46  ;;  %3046 = vmatprep.subr.mxu1 %v3045_v24  ;;  %v3069_v59 = vand.u32 4294901760, %v3068_v8  ;;  %v3075_v52 = vand.u32 4294901760, %v3074_v2  ;;  %v7148_v2 = vld [vmem:[#allocation50_spill] sm:$0xff]  ;;  %v7150_v24 = vld [vmem:[#allocation19_spill] sm:$0xff]  ;;  %v7151_v8 = vld [vmem:[#allocation16_spill] sm:$0xff] }
 0x24b   :  { %2822 = vmatprep.subr.mxu0 %v6064_v61  ;;  %3052 = vmatpush1.msra.mxu1 %v3051_v45  ;;  %v3081_v62 = vand.u32 4294901760, %v3080_v13  ;;  %v7152_v45 = vld [vmem:[#allocation20_spill] sm:$0xff]  ;;  %v7155_v32 = vld [vmem:[#allocation34_spill] sm:$0xff]  ;;  %v7156_v13 = vld [vmem:[#allocation33_spill] sm:$0xff] }
 0x24c   :  { %2824 = vmatpush1.msra.mxu0 %v6088_v5  ;;  %3058 = vmatprep.subr.mxu1 %v3057_v16  ;;  %v7154_v16 = vld [vmem:[#allocation31_spill] sm:$0xff] }
 0x24d   :  { %2826 = vmatprep.subr.mxu0 %v6100_v27  ;;  %3064 = vmatpush1.msra.mxu1 %v3063_v49  ;;  %v7157_v49 = vld [vmem:[#allocation25_spill] sm:$0xff] }
 0x24e   :  { %2828 = vmatpush1.msra.mxu0 %v6113_v23  ;;  %3070 = vmatprep.subr.mxu1 %v3069_v59  ;;  %v7159_v59 = vld [vmem:[#allocation17_spill] sm:$0xff] }
 0x24f   :  { %2830 = vmatprep.subr.mxu0 %v6124_v44  ;;  %3076 = vmatpush1.msra.mxu1 %v3075_v52  ;;  %v7160_v52 = vld [vmem:[#allocation35_spill] sm:$0xff] }
 0x250   :  { %2832 = vmatpush1.msra.mxu0 %v6137_v55  ;;  %3082 = vmatprep.subr.mxu1 %v3081_v62  ;;  %v7161_v62 = vld [vmem:[#allocation18_spill] sm:$0xff] }
 0x251   :  { %2834 = vmatprep.subr.mxu0 %v6150_v40  ;;  %3088 = vmatpush1.msra.mxu1 %v3087_v26  ;;  %v7162_v26 = vld [vmem:[#allocation41_spill] sm:$0xff] }
 0x252   :  { %2836 = vmatpush1.msra.mxu0 %v6159_v43  ;;  %3123 = vmatmul.mubr.f32.vlgmr.msra.gmra.mxu1 %v7114_v51  ;;  %v7165_v51 = vld [vmem:[#allocation43_spill] sm:$0xff] }
 0x253   :  { %2838 = vmatprep.subr.mxu0 %v6172_v14  ;;  %3267 = vmatprep.subr.mxu1 %v5871_v4 }
 0x254   :  { %2840 = vmatpush1.msra.mxu0 %v6181_v39  ;;  %3269 = vmatpush1.msra.mxu1 %v5879_v34 }
 0x255   :  { %2842 = vmatprep.subr.mxu0 %v6189_v21  ;;  %3271 = vmatprep.subr.mxu1 %v5884_v47 }
 0x256   :  { %2844 = vmatpush1.msra.mxu0 %v6200_v11  ;;  %3273 = vmatpush1.msra.mxu1 %v5892_v30 }
 0x257   :  { %2846 = vmatprep.subr.mxu0 %v6208_v9  ;;  %3275 = vmatprep.subr.mxu1 %v5897_v7 }
 0x258   :  { %2848 = vmatpush1.msra.mxu0 %v6218_v63  ;;  %3277 = vmatpush1.msra.mxu1 %v5905_v1 }
 0x259   :  { %2850 = vmatprep.subr.mxu0 %v6228_v18  ;;  %3279 = vmatprep.subr.mxu1 %v5913_v3 }
 0x25a   :  { %2852 = vmatpush1.msra.mxu0 %v6238_v25  ;;  %2885 = vmatprep.mubr.f32.mxu0 %v7037_v50 }
 0x25b   :  { %3281 = vmatpush1.msra.mxu1 %v5922_v58  ;;  %2891 = vmatmul.mubr.f32.vlgmr.msra.gmra.mxu0 %v7148_v2  ;;  %v7163_v2 = vld [vmem:[#allocation21_spill] sm:$0xff] }
 0x25c   :  { %3131 = vmatprep.subr.mxu0 %v5890_v22  ;;  %3283 = vmatprep.subr.mxu1 %v5930_v60 }
 0x25d   :  { %3134 = vmatpush1.msra.mxu0 %v7149_v38  ;;  %3285 = vmatpush1.msra.mxu1 %v5939_v37 }
 0x25e   :  { %3137 = vmatprep.subr.mxu0 %v7150_v24  ;;  %3287 = vmatprep.subr.mxu1 %v5948_v42 }
 0x25f   :  { %3140 = vmatpush1.msra.mxu0 %v7151_v8  ;;  %3289 = vmatpush1.msra.mxu1 %v5962_v33 }
 0x260   :  { %3143 = vmatprep.subr.mxu0 %v7152_v45  ;;  %3291 = vmatprep.subr.mxu1 %v5971_v54 }
 0x261   :  { %3146 = vmatpush1.msra.mxu0 %v7153_v6  ;;  %3293 = vmatpush1.msra.mxu1 %v5985_v20 }
 0x262   :  { %3149 = vmatprep.subr.mxu0 %v7154_v16  ;;  %3295 = vmatprep.subr.mxu1 %v5999_v12 }
 0x263   :  { %3152 = vmatpush1.msra.mxu0 %v7155_v32  ;;  %3297 = vmatpush1.msra.mxu1 %v6026_v46 }
 0x264   :  { %3155 = vmatprep.subr.mxu0 %v7156_v13  ;;  %3299 = vmatprep.subr.mxu1 %v6064_v61 }
 0x265   :  { %3158 = vmatpush1.msra.mxu0 %v7157_v49  ;;  %3301 = vmatpush1.msra.mxu1 %v6088_v5 }
 0x266   :  { %3161 = vmatprep.subr.mxu0 %v7158_v48  ;;  %3303 = vmatprep.subr.mxu1 %v6100_v27 }
 0x267   :  { %3164 = vmatpush1.msra.mxu0 %v7159_v59  ;;  %3305 = vmatpush1.msra.mxu1 %v6113_v23 }
 0x268   :  { %3167 = vmatprep.subr.mxu0 %v7160_v52  ;;  %3307 = vmatprep.subr.mxu1 %v6124_v44  ;;  %v7166_v44 = vld [vmem:[#allocation23_spill] sm:$0xff] }
 0x269   :  { %3170 = vmatpush1.msra.mxu0 %v7161_v62  ;;  %3309 = vmatpush1.msra.mxu1 %v6137_v55 }
 0x26a   :  { %3173 = vmatprep.subr.mxu0 %v7162_v26  ;;  %3311 = vmatprep.subr.mxu1 %v6150_v40 }
 0x26b   :  { %3176 = vmatpush1.msra.mxu0 %v7163_v2  ;;  %3313 = vmatpush1.msra.mxu1 %v6159_v43 }
 0x26c   :  { %3179 = vmatprep.subr.mxu0 %v7164_v41  ;;  %3315 = vmatprep.subr.mxu1 %v6172_v14 }
 0x26d   :  { %3182 = vmatpush1.msra.mxu0 %v7165_v51  ;;  %3317 = vmatpush1.msra.mxu1 %v6181_v39 }
 0x26e   :  { %3185 = vmatprep.subr.mxu0 %v7166_v44  ;;  %3319 = vmatprep.subr.mxu1 %v6189_v21 }
 0x26f   :  { %3188 = vmatpush1.msra.mxu0 %v6157_v53  ;;  %3321 = vmatpush1.msra.mxu1 %v6200_v11  ;;  %v7167_v11 = vld [vmem:[#allocation49_spill] sm:$0xff] }
 0x270   :  { %3191 = vmatprep.subr.mxu0 %v6170_v28  ;;  %3323 = vmatprep.subr.mxu1 %v6208_v9 }
 0x271   :  { %3194 = vmatpush1.msra.mxu0 %v6179_v29  ;;  %3325 = vmatpush1.msra.mxu1 %v6218_v63 }
 0x272   :  { %3197 = vmatprep.subr.mxu0 %v6187_v35  ;;  %3327 = vmatprep.subr.mxu1 %v6228_v18 }
 0x273   :  { %3200 = vmatpush1.msra.mxu0 %v6198_v0  ;;  %3329 = vmatpush1.msra.mxu1 %v6238_v25 }
 0x274   :  { %3362 = vmatprep.mubr.f32.mxu1 %v7037_v50  ;;  %3203 = vmatprep.subr.mxu0 %v6206_v36 }
 0x275   :  { %3366 = vmatmul.mubr.f32.vlgmr.msra.gmra.mxu1 %v7167_v11  ;;  %3541 = vmatprep.subr.mxu1 %v5871_v4  ;;  %v7168_v4 = vld [vmem:[#allocation48_spill] sm:$0xff]  ;;  %v7200_v11 = vand.u32 4294901760, %v6246_v56 }
 0x276   :  { %3206 = vmatpush1.msra.mxu0 %v6216_v17  ;;  %3543 = vmatpush1.msra.mxu1 %v5879_v34  ;;  %v7169_v34 = vand.u32 4294901760, %v5890_v22  ;;  %v7173_v22 = vand.u32 4294901760, %v7152_v45 }
 0x277   :  { %3209 = vmatprep.subr.mxu0 %v6226_v15  ;;  %3545 = vmatprep.subr.mxu1 %v5884_v47  ;;  %v7170_v47 = vand.u32 4294901760, %v7149_v38 }
 0x278   :  { %3212 = vmatpush1.msra.mxu0 %v6236_v57  ;;  %3547 = vmatpush1.msra.mxu1 %v5892_v30  ;;  %v7171_v30 = vand.u32 4294901760, %v7150_v24 }
 0x279   :  { %3215 = vmatprep.subr.mxu0 %v6246_v56  ;;  %3549 = vmatprep.subr.mxu1 %v5897_v7  ;;  %v7172_v7 = vand.u32 4294901760, %v7151_v8 }
 0x27a   :  { %3218 = vmatpush1.msra.mxu0 %v6254_v31  ;;  %3551 = vmatpush1.msra.mxu1 %v5905_v1  ;;  %v7174_v1 = vand.u32 4294901760, %v7153_v6 }
 0x27b   :  { %3221 = vmatprep.subr.mxu0 %v6262_v19  ;;  %3553 = vmatprep.subr.mxu1 %v5913_v3  ;;  %v7175_v3 = vand.u32 4294901760, %v7154_v16 }
 0x27c   :  { %3224 = vmatpush1.msra.mxu0 %v6270_v10  ;;  %3257 = vmatprep.mubr.f32.mxu0 %v7037_v50 }
 0x27d   :  { %3555 = vmatpush1.msra.mxu1 %v5922_v58  ;;  %3260 = vmatmul.mubr.f32.vlgmr.msra.gmra.mxu0 %v7168_v4  ;;  %v7176_v58 = vand.u32 4294901760, %v7155_v32 }
 0x27e   :  { %3375 = vmatprep.subr.mxu0 %v7169_v34  ;;  %3557 = vmatprep.subr.mxu1 %v5930_v60  ;;  %v7177_v60 = vand.u32 4294901760, %v7156_v13 }
 0x27f   :  { %3379 = vmatpush1.msra.mxu0 %v7170_v47  ;;  %3559 = vmatpush1.msra.mxu1 %v5939_v37  ;;  %v7178_v37 = vand.u32 4294901760, %v7157_v49 }
 0x280   :  { %3383 = vmatprep.subr.mxu0 %v7171_v30  ;;  %3561 = vmatprep.subr.mxu1 %v5948_v42  ;;  %v7179_v42 = vand.u32 4294901760, %v7158_v48 }
 0x281   :  { %3387 = vmatpush1.msra.mxu0 %v7172_v7  ;;  %3563 = vmatpush1.msra.mxu1 %v5962_v33  ;;  %v7180_v33 = vand.u32 4294901760, %v7159_v59  ;;  %v4107_v59 = vld [vmem:[#allocation2] sm:$0xff] }
 0x282   :  { %3391 = vmatprep.subr.mxu0 %v7173_v22  ;;  %3565 = vmatprep.subr.mxu1 %v5971_v54  ;;  %v7181_v54 = vand.u32 4294901760, %v7160_v52 }
 0x283   :  { %3395 = vmatpush1.msra.mxu0 %v7174_v1  ;;  %3567 = vmatpush1.msra.mxu1 %v5985_v20  ;;  %v7182_v20 = vld [vmem:[#allocation22_spill] sm:$0xff] }
 0x284   :  { %3399 = vmatprep.subr.mxu0 %v7175_v3  ;;  %3569 = vmatprep.subr.mxu1 %v5999_v12  ;;  %v7183_v12 = vand.u32 4294901760, %v7161_v62 }
 0x285   :  { %3403 = vmatpush1.msra.mxu0 %v7176_v58  ;;  %3571 = vmatpush1.msra.mxu1 %v6026_v46  ;;  %v7184_v46 = vand.u32 4294901760, %v7162_v26 }
 0x286   :  { %3407 = vmatprep.subr.mxu0 %v7177_v60  ;;  %3573 = vmatprep.subr.mxu1 %v6064_v61  ;;  %v7187_v61 = vand.u32 4294901760, %v7165_v51  ;;  %v7192_v51 = vand.u32 4294901760, %v6179_v29  ;;  %v7198_v29 = vand.u32 4294901760, %v6226_v15 }
 0x287   :  { %3411 = vmatpush1.msra.mxu0 %v7178_v37  ;;  %3575 = vmatpush1.msra.mxu1 %v6088_v5  ;;  %v7188_v5 = vand.u32 4294901760, %v7166_v44  ;;  %v7193_v44 = vand.u32 4294901760, %v6187_v35  ;;  %v7201_v35 = vand.u32 4294901760, %v6254_v31 }
 0x288   :  { %3415 = vmatprep.subr.mxu0 %v7179_v42  ;;  %3577 = vmatprep.subr.mxu1 %v6100_v27  ;;  %v7185_v27 = vand.u32 4294901760, %v7163_v2 }
 0x289   :  { %3419 = vmatpush1.msra.mxu0 %v7180_v33  ;;  %3579 = vmatpush1.msra.mxu1 %v6113_v23  ;;  %v7186_v23 = vand.u32 4294901760, %v7164_v41 }
 0x28a   :  { %3423 = vmatprep.subr.mxu0 %v7181_v54  ;;  %3581 = vmatprep.subr.mxu1 %v7182_v20 }
 0x28b   :  { %3427 = vmatpush1.msra.mxu0 %v7183_v12  ;;  %3583 = vmatpush1.msra.mxu1 %v6137_v55  ;;  %v7189_v55 = vand.u32 4294901760, %v6157_v53  ;;  %v7194_v53 = vand.u32 4294901760, %v6198_v0 }
 0x28c   :  { %3431 = vmatprep.subr.mxu0 %v7184_v46  ;;  %3585 = vmatprep.subr.mxu1 %v6150_v40  ;;  %v7190_v40 = vld [vmem:[#allocation40_spill] sm:$0xff] }
 0x28d   :  { %3435 = vmatpush1.msra.mxu0 %v7185_v27  ;;  %3587 = vmatpush1.msra.mxu1 %v6159_v43  ;;  %v7191_v43 = vand.u32 4294901760, %v6170_v28  ;;  %v7195_v28 = vand.u32 4294901760, %v6206_v36  ;;  %v7202_v36 = vand.u32 4294901760, %v6262_v19 }
 0x28e   :  { %3439 = vmatprep.subr.mxu0 %v7186_v23  ;;  %3589 = vmatprep.subr.mxu1 %v6172_v14  ;;  %v7197_v14 = vand.u32 4294901760, %v6216_v17  ;;  %v7203_v17 = vand.u32 4294901760, %v6270_v10 }
 0x28f   :  { %3443 = vmatpush1.msra.mxu0 %v7187_v61  ;;  %3591 = vmatpush1.msra.mxu1 %v6181_v39  ;;  %v7199_v39 = vand.u32 4294901760, %v6236_v57 }
 0x290   :  { %3447 = vmatprep.subr.mxu0 %v7188_v5  ;;  %3593 = vmatprep.subr.mxu1 %v6189_v21  ;;  %v4108_v5 = vld [vmem:[#allocation2 + $0x8] sm:$0xff] }
 0x291   :  { %3451 = vmatpush1.msra.mxu0 %v7189_v55  ;;  %3595 = vmatpush1.msra.mxu1 %v7190_v40 }
 0x292   :  { %3455 = vmatprep.subr.mxu0 %v7191_v43  ;;  %3597 = vmatprep.subr.mxu1 %v6208_v9  ;;  %v7196_v9 = vld [vmem:[#allocation47_spill] sm:$0xff] }
 0x293   :  { %3459 = vmatpush1.msra.mxu0 %v7192_v51  ;;  %3599 = vmatpush1.msra.mxu1 %v6218_v63 }
 0x294   :  { %3463 = vmatprep.subr.mxu0 %v7193_v44  ;;  %3601 = vmatprep.subr.mxu1 %v6228_v18 }
 0x295   :  { %3467 = vmatpush1.msra.mxu0 %v7194_v53  ;;  %3603 = vmatpush1.msra.mxu1 %v6238_v25 }
 0x296   :  { %3636 = vmatprep.mubr.f32.mxu1 %v7037_v50  ;;  %3471 = vmatprep.subr.mxu0 %v7195_v28 }
 0x297   :  { %3638 = vmatmul.mubr.f32.vlgmr.msra.gmra.mxu1 %v7196_v9  ;;  %3475 = vmatpush1.msra.mxu0 %v7197_v14 }
 0x298   :  { %3532 = vmatprep.mubr.f32.mxu0 %v7037_v50  ;;  %3479 = vmatprep.subr.mxu0 %v7198_v29 }
 0x299   :  { %3483 = vmatpush1.msra.mxu0 %v7199_v39 }
 0x29a   :  { %3487 = vmatprep.subr.mxu0 %v7200_v11 }
 0x29b   :  { %3491 = vmatpush1.msra.mxu0 %v7201_v35 }
 0x29c   :  { %3495 = vmatprep.subr.mxu0 %v7202_v36 }
 0x29d   :  { %3499 = vmatpush1.msra.mxu0 %v7203_v17 }
 0x29e   :  { %3534 = vmatmul.mubr.f32.vlgmr.msra.gmra.mxu0 %v7196_v9 }
 0x2ae   :  { %v2269_v15 = vpop.f32.mrf.mxu1 }
 0x2b0   :  { %v2271_v57 = vpop.f32.mrf.mxu1 }
 0x2b6   :  { %v2037_v50 = vpop.f32.mrf.mxu0 }
 0x2b7   :  { %v2270_v63 = vadd.f32 %v2269_v15, %v2037_v50 }
 0x2b8   :  { %v2039_v21 = vpop.f32.mrf.mxu0 }
 0x2b9   :  { %v2272_v25 = vadd.f32 %v2271_v57, %v2039_v21 }
 0x2ce   :  { %v2512_v18 = vpop.f32.mrf.mxu1 }
 0x2d0   :  { %v2514_v38 = vpop.f32.mrf.mxu1 }
 0x2d7   :  { %v2406_v0 = vpop.f32.mrf.mxu0 }
 0x2d8   :  { %v2407_v41 = vadd.f32 %v2406_v0, %v2270_v63 }
 0x2d9   :  { %v2408_v56 = vpop.f32.mrf.mxu0 }
 0x2da   :  { %v2409_v31 = vadd.f32 %v2408_v56, %v2272_v25  ;;  %v2513_v24 = vadd.f32 %v2512_v18, %v2407_v41 }
 0x2dc   :  { %v2515_v10 = vadd.f32 %v2514_v38, %v2409_v31 }
 0x2f0   :  { %v2784_v19 = vpop.f32.mrf.mxu1 }
 0x2f2   :  { %v2786_v32 = vpop.f32.mrf.mxu1 }
 0x2fb   :  { %v2680_v8 = vpop.f32.mrf.mxu0 }
 0x2fc   :  { %v2681_v45 = vadd.f32 %v2680_v8, %v2513_v24 }
 0x2fd   :  { %v2682_v6 = vpop.f32.mrf.mxu0 }
 0x2fe   :  { %v2683_v16 = vadd.f32 %v2682_v6, %v2515_v10  ;;  %v2785_v13 = vadd.f32 %v2784_v19, %v2681_v45 }
 0x300   :  { %v2787_v49 = vadd.f32 %v2786_v32, %v2683_v16 }
 0x302   :  { %v3648_v48 = vcombine.low %v2785_v13, %v2787_v49 }
 0x304   :  { %v3652_v52 = vmul.f32 %v4107_v59, %v3648_v48 }
 0x306   :  { %3654 = vst [vmem:[#allocation10] sm:$0xff] %v3652_v52 }
 0x312   :  { %v3124_v26 = vpop.f32.mrf.mxu1 }
 0x314   :  { %v3126_v34 = vpop.f32.mrf.mxu1 }
 0x31b   :  { %v2892_v62 = vpop.f32.mrf.mxu0 }
 0x31c   :  { %v3125_v47 = vadd.f32 %v3124_v26, %v2892_v62 }
 0x31d   :  { %v2894_v2 = vpop.f32.mrf.mxu0 }
 0x31e   :  { %v3127_v22 = vadd.f32 %v3126_v34, %v2894_v2 }
 0x335   :  { %v3367_v30 = vpop.f32.mrf.mxu1 }
 0x337   :  { %v3369_v58 = vpop.f32.mrf.mxu1 }
 0x33d   :  { %v3261_v4 = vpop.f32.mrf.mxu0 }
 0x33e   :  { %v3262_v1 = vadd.f32 %v3261_v4, %v3125_v47 }
 0x33f   :  { %v3263_v7 = vpop.f32.mrf.mxu0 }
 0x340   :  { %v3264_v3 = vadd.f32 %v3263_v7, %v3127_v22  ;;  %v3368_v60 = vadd.f32 %v3367_v30, %v3262_v1 }
 0x342   :  { %v3370_v54 = vadd.f32 %v3369_v58, %v3264_v3 }
 0x357   :  { %v3639_v37 = vpop.f32.mrf.mxu1 }
 0x359   :  { %v3641_v46 = vpop.f32.mrf.mxu1 }
 0x35e   :  { %v3535_v42 = vpop.f32.mrf.mxu0 }
 0x35f   :  { %v3536_v33 = vadd.f32 %v3535_v42, %v3368_v60 }
 0x360   :  { %v3537_v20 = vpop.f32.mrf.mxu0 }
 0x361   :  { %v3538_v12 = vadd.f32 %v3537_v20, %v3370_v54  ;;  %v3640_v27 = vadd.f32 %v3639_v37, %v3536_v33 }
 0x363   :  { %v3642_v23 = vadd.f32 %v3641_v46, %v3538_v12 }
 0x365   :  { %v3649_v61 = vcombine.low %v3640_v27, %v3642_v23 }
 0x367   :  { %v3653_v55 = vmul.f32 %v4108_v5, %v3649_v61 }
 0x369   :  { %3655 = vst [vmem:[#allocation10 + $0x8] sm:$0xff] %v3653_v55 }
 0x36a   :  { %4200 = shalt.err (!%p4197_p10)
}
 0x36b   :  { %3665 = dma.vmem_to_hbm [thread:$0]  %s3663_s3, 256, %s6502_s4, [#allocation4]  }
 0x36c   :  { %4215 = dma.done.wait [#allocation4], 256  }
 0x36d   :  { %4216 = vsyncadd [#allocation4], 4294967040 }
 0x36e   :  { %3669 = vsyncpa [#allocation3], 1 }
 0x36f   :  { %3670 = vsyncpa [#allocation6], 1 }
 0x370   :  { %3671 = vsyncpa [#allocation9], 1 }
 0x371   :  { %3672 = vsyncpa [#allocation4], 1 }

</bundles_post_ra>
